<compile_context>
chip_gen: v6e
topology: v6e:2x2x1
jax: 0.10.0
libtpu: 0.0.40
codegen_flags: <defaults>
</compile_context>

<pallas_src>
import functools

import jax
import jax.numpy as jnp
from jax.experimental import pallas as pl
from jax.experimental.pallas import tpu as pltpu


def _layernorm(x, gamma, beta, eps=1e-5):
    # x: (S, H) f32, gamma/beta: (1, H) f32
    mean = jnp.mean(x, axis=-1, keepdims=True)
    var = jnp.mean((x - mean) ** 2, axis=-1, keepdims=True)
    inv = jax.lax.rsqrt(var + eps)
    return (x - mean) * inv * gamma + beta


def _gelu_exact(x):
    # nn.GELU() default: exact erf formulation (f32 VALU/EUP path).
    return 0.5 * x * (1.0 + jax.lax.erf(x / jnp.sqrt(2.0).astype(x.dtype)))


def encoder_layer_kernel(
    x_ref, bias_ref,
    ln1_g_ref, ln1_b_ref,
    wqkv_ref, bqkv_ref, wo_ref, bo_ref,
    ln2_g_ref, ln2_b_ref,
    w1_ref, b1_ref, w2_ref, b2_ref,
    out_ref,
    ctx_ref,                      # (S, H) bf16 VMEM scratch: head-concat buffer
    *, num_heads: int,
):
    x = x_ref[0]                               # (S, H) f32
    S, H = x.shape
    dk = H // num_heads
    scale = jnp.float32(dk) ** -0.5

    # ---- self-attention branch ----
    y = _layernorm(x, ln1_g_ref[...], ln1_b_ref[...])
    y_bf = y.astype(jnp.bfloat16)

    # Fused QKV projection: one MXU call with N=3H, f32 accumulate.
    qkv = jnp.dot(y_bf, wqkv_ref[...],
                  preferred_element_type=jnp.float32) + bqkv_ref[...]
    # Scale folded into q once, after bias (matches torch: q = linear_q(y)*scale).
    q = qkv[:, :H] * scale
    # bf16 casts hoisted out of the head loop (full-width, not per-head slices).
    q_bf = q.astype(jnp.bfloat16)
    k_bf = qkv[:, H:2 * H].astype(jnp.bfloat16)
    v_bf = qkv[:, 2 * H:].astype(jnp.bfloat16)

    # Static head loop (small num_heads / toy S): lane slices stay static.
    # TODO(synk): at realistic S convert to a non-unrolled fori_loop or grid
    # axis with online softmax to bound the (S,S) score live-set.
    for h in range(num_heads):
        sl = slice(h * dk, (h + 1) * dk)
        # q_h @ k_h^T without an explicit transpose op (contract last dims).
        s = jax.lax.dot_general(q_bf[:, sl], k_bf[:, sl],
                                (((1,), (1,)), ((), ())),
                                preferred_element_type=jnp.float32)   # (S, S)
        s = s + bias_ref[0, h].astype(jnp.float32)                    # bias add (f32)

        s_max = jnp.max(s, axis=-1, keepdims=True)
        p = jnp.exp(s - s_max)
        p = p * pl.reciprocal(jnp.sum(p, axis=-1, keepdims=True), approx=True)

        ctx = jnp.dot(p.astype(jnp.bfloat16), v_bf[:, sl],
                      preferred_element_type=jnp.float32)             # (S, dk)
        # Lane-offset store into the head-concat scratch (vst slot has slack);
        # the output projection below is then a single K=H matmul.
        ctx_ref[:, sl] = ctx.astype(jnp.bfloat16)

    attn = jnp.dot(ctx_ref[...], wo_ref[...],
                   preferred_element_type=jnp.float32) + bo_ref[...]
    # (attention / residual dropouts are identity in eval mode)
    x1 = x + attn

    # ---- feed-forward branch ----
    y2 = _layernorm(x1, ln2_g_ref[...], ln2_b_ref[...])
    h1 = jnp.dot(y2.astype(jnp.bfloat16), w1_ref[...],
                 preferred_element_type=jnp.float32) + b1_ref[...]
    h1 = _gelu_exact(h1)
    h2 = jnp.dot(h1.astype(jnp.bfloat16), w2_ref[...],
                 preferred_element_type=jnp.float32) + b2_ref[...]
    out_ref[0] = x1 + h2


def encoder_layer(x, attn_bias, params, *, num_heads):
    B, S, H = x.shape
    F = params["w1"].shape[1]
    NH = num_heads
    bf16 = jnp.bfloat16

    # Boundary packing/casts (done once, outside the grid):
    #   weights -> bf16; Wq|Wk|Wv fused to (H, 3H); biases to (1, 3H);
    #   attn_bias -> bf16 (dominant HBM stream at realistic NH*S*S).
    wqkv = jnp.concatenate(
        [params["wq"], params["wk"], params["wv"]], axis=1).astype(bf16)
    bqkv = jnp.concatenate([params["bq"], params["bk"], params["bv"]], axis=1)
    wo = params["wo"].astype(bf16)
    w1 = params["w1"].astype(bf16)
    w2 = params["w2"].astype(bf16)
    bias_bf = attn_bias.astype(bf16)

    kernel = functools.partial(encoder_layer_kernel, num_heads=NH)

    # Advisory cost estimate (per full call) for XLA's scheduler.
    flops = int(B * (2 * S * H * 3 * H          # fused QKV projection
                     + 4 * S * S * H            # QK^T + PV over all heads
                     + 2 * S * H * H            # output projection
                     + 4 * S * H * F))          # FFN
    transcendentals = int(B * (NH * S * S + S * F))      # softmax exp + gelu erf
    bytes_accessed = int(
        2 * B * S * H * 4                        # x in + out (f32)
        + B * NH * S * S * 2                     # attn_bias (bf16)
        + (3 * H * H + H * H + 2 * H * F) * 2    # bf16 weights
        + (3 * H + 2 * H + F + 4 * H) * 4)       # f32 biases / LN params

    def _call(single_buffer: bool):
        def const(shape):
            n = len(shape)
            idx = (lambda b, _n=n: (0,) * _n)
            if single_buffer:
                # Constant-index blocks never re-DMA across grid=(B,): a single
                # buffer halves their VMEM residency (matters on v7x's 64 MiB).
                return pl.BlockSpec(shape, idx, pipeline_mode=pl.Buffered(1))
            return pl.BlockSpec(shape, idx)

        in_specs = [
            pl.BlockSpec((1, S, H), lambda b: (b, 0, 0)),                # x
            pl.BlockSpec((1, NH, S, S), lambda b: (b, 0, 0, 0)),         # attn_bias (bf16)
            const((1, H)), const((1, H)),                                # ln1 gamma/beta
            const((H, 3 * H)), const((1, 3 * H)),                        # Wqkv, bqkv
            const((H, H)), const((1, H)),                                # Wo, bo
            const((1, H)), const((1, H)),                                # ln2 gamma/beta
            const((H, F)), const((1, F)),                                # W1, b1
            const((F, H)), const((1, H)),                                # W2, b2
        ]

        return pl.pallas_call(
            kernel,
            out_shape=jax.ShapeDtypeStruct((B, S, H), jnp.float32),
            grid=(B,),
            in_specs=in_specs,
            out_specs=pl.BlockSpec((1, S, H), lambda b: (b, 0, 0)),
            scratch_shapes=[pltpu.VMEM((S, H), bf16)],        # head-concat buffer
            compiler_params=pltpu.CompilerParams(
                # B even -> balanced split across v7x's 2 TCs; no-op on v5e/v6e.
                dimension_semantics=("parallel",),
                # Stays under v7x's 64 MiB physical VMEM; raise toward ~100 MiB
                # on v6e if larger S tiles are wanted.
                vmem_limit_bytes=56 * 1024 * 1024),
            cost_estimate=pl.CostEstimate(
                flops=flops, transcendentals=transcendentals,
                bytes_accessed=bytes_accessed),
        )(
            x, bias_bf,
            params["ln1_g"], params["ln1_b"],
            wqkv, bqkv, wo, params["bo"],
            params["ln2_g"], params["ln2_b"],
            w1, params["b1"], w2, params["b2"],
        )

    try:
        return _call(True)
    except Exception:
        # Fallback for jax versions without BlockSpec(pipeline_mode=Buffered(1)).
        return _call(False)


def encoder_layer_ref(x, attn_bias, params, *, num_heads):
    """Pure-JAX f32 reference mirroring the PyTorch forward (eval mode)."""
    B, S, H = x.shape
    dk = H // num_heads
    scale = dk ** -0.5

    def ln(t, g, b, eps=1e-5):
        m = jnp.mean(t, axis=-1, keepdims=True)
        v = jnp.mean((t - m) ** 2, axis=-1, keepdims=True)
        return (t - m) / jnp.sqrt(v + eps) * g + b

    y = ln(x, params["ln1_g"], params["ln1_b"])
    q = (y @ params["wq"] + params["bq"]).reshape(B, S, num_heads, dk).transpose(0, 2, 1, 3)
    k = (y @ params["wk"] + params["bk"]).reshape(B, S, num_heads, dk).transpose(0, 2, 1, 3)
    v = (y @ params["wv"] + params["bv"]).reshape(B, S, num_heads, dk).transpose(0, 2, 1, 3)
    s = jnp.einsum("bhqd,bhkd->bhqk", q * scale, k) + attn_bias
    p = jax.nn.softmax(s, axis=-1)
    a = jnp.einsum("bhqk,bhkd->bhqd", p, v).transpose(0, 2, 1, 3).reshape(B, S, H)
    a = a @ params["wo"] + params["bo"]
    x1 = x + a
    y2 = ln(x1, params["ln2_g"], params["ln2_b"])
    h1 = jax.nn.gelu(y2 @ params["w1"] + params["b1"], approximate=False)
    h2 = h1 @ params["w2"] + params["b2"]
    return x1 + h2


def make_params(key, H, F):
    ks = jax.random.split(key, 8)
    s = 0.05
    return {
        "ln1_g": jnp.ones((1, H), jnp.float32),
        "ln1_b": jnp.zeros((1, H), jnp.float32),
        "wq": s * jax.random.normal(ks[0], (H, H), jnp.float32),
        "bq": jnp.zeros((1, H), jnp.float32),
        "wk": s * jax.random.normal(ks[1], (H, H), jnp.float32),
        "bk": jnp.zeros((1, H), jnp.float32),
        "wv": s * jax.random.normal(ks[2], (H, H), jnp.float32),
        "bv": jnp.zeros((1, H), jnp.float32),
        "wo": s * jax.random.normal(ks[3], (H, H), jnp.float32),
        "bo": jnp.zeros((1, H), jnp.float32),
        "ln2_g": jnp.ones((1, H), jnp.float32),
        "ln2_b": jnp.zeros((1, H), jnp.float32),
        "w1": s * jax.random.normal(ks[4], (H, F), jnp.float32),
        "b1": jnp.zeros((1, F), jnp.float32),
        "w2": s * jax.random.normal(ks[5], (F, H), jnp.float32),
        "b2": jnp.zeros((1, H), jnp.float32),
    }


if __name__ == "__main__":
    B, S, H, F, NH = 2, 8, 32, 64, 4
    key = jax.random.PRNGKey(0)
    kx, kb, kp = jax.random.split(key, 3)

    x = jax.random.normal(kx, (B, S, H), jnp.float32)
    attn_bias = 0.1 * jax.random.normal(kb, (B, NH, S, S), jnp.float32)
    params = make_params(kp, H, F)

    out = encoder_layer(x, attn_bias, params, num_heads=NH)
    out = jax.block_until_ready(out)

    # Reference uses the same bf16-rounded weights and attn_bias (upcast to
    # f32) so the only remaining mismatch is bf16 activation rounding + the
    # approx reciprocal in the softmax denominator.
    weight_keys = {"wq", "wk", "wv", "wo", "w1", "w2"}
    params_q = {
        k: (v.astype(jnp.bfloat16).astype(jnp.float32) if k in weight_keys else v)
        for k, v in params.items()
    }
    attn_bias_q = attn_bias.astype(jnp.bfloat16).astype(jnp.float32)
    ref = encoder_layer_ref(x, attn_bias_q, params_q, num_heads=NH)

    assert out.shape == (B, S, H)
    assert jnp.allclose(out, ref, rtol=1e-2, atol=1e-2), "mismatch vs JAX reference"

    print("KERNEL_OK")
</pallas_src>

<mosaic_0001>
module attributes {stable_mosaic.version = 11 : i64} {
  func.func @encoder_layer_kernel(%arg0: i32, %arg1: memref<1x8x32xf32, #tpu.memory_space<vmem>>, %arg2: memref<1x4x8x8xbf16, #tpu.memory_space<vmem>>, %arg3: memref<1x32xf32, #tpu.memory_space<vmem>>, %arg4: memref<1x32xf32, #tpu.memory_space<vmem>>, %arg5: memref<32x96xbf16, #tpu.memory_space<vmem>>, %arg6: memref<1x96xf32, #tpu.memory_space<vmem>>, %arg7: memref<32x32xbf16, #tpu.memory_space<vmem>>, %arg8: memref<1x32xf32, #tpu.memory_space<vmem>>, %arg9: memref<1x32xf32, #tpu.memory_space<vmem>>, %arg10: memref<1x32xf32, #tpu.memory_space<vmem>>, %arg11: memref<32x64xbf16, #tpu.memory_space<vmem>>, %arg12: memref<1x64xf32, #tpu.memory_space<vmem>>, %arg13: memref<64x32xbf16, #tpu.memory_space<vmem>>, %arg14: memref<1x32xf32, #tpu.memory_space<vmem>>, %arg15: memref<1x8x32xf32, #tpu.memory_space<vmem>>, %arg16: memref<8x32xbf16, #tpu.memory_space<vmem>>) attributes {dimension_semantics = [#tpu.dimension_semantics<parallel>], iteration_bounds = array<i64: 2>, scalar_prefetch = 0 : i64, scratch_operands = 1 : i64, tpu.core_type = #tpu.core_type<tc>, window_params = [{transform_indices = @transform_0, window_bounds = array<i64: 1, 8, 32>}, {transform_indices = @transform_1, window_bounds = array<i64: 1, 4, 8, 8>}, {pipeline_mode = #tpu.pipeline_mode<synchronous>, transform_indices = @transform_2, window_bounds = array<i64: 1, 32>}, {pipeline_mode = #tpu.pipeline_mode<synchronous>, transform_indices = @transform_3, window_bounds = array<i64: 1, 32>}, {pipeline_mode = #tpu.pipeline_mode<synchronous>, transform_indices = @transform_4, window_bounds = array<i64: 32, 96>}, {pipeline_mode = #tpu.pipeline_mode<synchronous>, transform_indices = @transform_5, window_bounds = array<i64: 1, 96>}, {pipeline_mode = #tpu.pipeline_mode<synchronous>, transform_indices = @transform_6, window_bounds = array<i64: 32, 32>}, {pipeline_mode = #tpu.pipeline_mode<synchronous>, transform_indices = @transform_7, window_bounds = array<i64: 1, 32>}, {pipeline_mode = #tpu.pipeline_mode<synchronous>, transform_indices = @transform_8, window_bounds = array<i64: 1, 32>}, {pipeline_mode = #tpu.pipeline_mode<synchronous>, transform_indices = @transform_9, window_bounds = array<i64: 1, 32>}, {pipeline_mode = #tpu.pipeline_mode<synchronous>, transform_indices = @transform_10, window_bounds = array<i64: 32, 64>}, {pipeline_mode = #tpu.pipeline_mode<synchronous>, transform_indices = @transform_11, window_bounds = array<i64: 1, 64>}, {pipeline_mode = #tpu.pipeline_mode<synchronous>, transform_indices = @transform_12, window_bounds = array<i64: 64, 32>}, {pipeline_mode = #tpu.pipeline_mode<synchronous>, transform_indices = @transform_13, window_bounds = array<i64: 1, 32>}, {transform_indices = @transform_14, window_bounds = array<i64: 1, 8, 32>}]} {
    %c0 = arith.constant 0 : index
    %c0_0 = arith.constant 0 : index
    %c0_1 = arith.constant 0 : index
    %0 = vector.load %arg1[%c0, %c0_0, %c0_1] : memref<1x8x32xf32, #tpu.memory_space<vmem>>, vector<1x8x32xf32>
    %1 = vector.shape_cast %0 : vector<1x8x32xf32> to vector<8x32xf32>
    %cst = arith.constant 8.000000e+00 : f32
    %cst_2 = arith.constant -5.000000e-01 : f32
    %2 = math.powf %cst, %cst_2 : f32
    %c0_3 = arith.constant 0 : index
    %c0_4 = arith.constant 0 : index
    %3 = vector.load %arg3[%c0_3, %c0_4] : memref<1x32xf32, #tpu.memory_space<vmem>>, vector<1x32xf32>
    %c0_5 = arith.constant 0 : index
    %c0_6 = arith.constant 0 : index
    %4 = vector.load %arg4[%c0_5, %c0_6] : memref<1x32xf32, #tpu.memory_space<vmem>>, vector<1x32xf32>
    %cst_7 = arith.constant dense<0.000000e+00> : vector<8xf32>
    %5 = vector.multi_reduction <add>, %1, %cst_7 [1] : vector<8x32xf32> to vector<8xf32>
    %6 = vector.shape_cast %5 : vector<8xf32> to vector<8x1xf32>
    %cst_8 = arith.constant 3.200000e+01 : f32
    %7 = vector.broadcast %cst_8 : f32 to vector<8x1xf32>
    %8 = arith.divf %6, %7 : vector<8x1xf32>
    %9 = vector.broadcast %8 : vector<8x1xf32> to vector<8x32xf32>
    %10 = arith.subf %1, %9 : vector<8x32xf32>
    %11 = arith.mulf %10, %10 : vector<8x32xf32>
    %cst_9 = arith.constant dense<0.000000e+00> : vector<8xf32>
    %12 = vector.multi_reduction <add>, %11, %cst_9 [1] : vector<8x32xf32> to vector<8xf32>
    %13 = vector.shape_cast %12 : vector<8xf32> to vector<8x1xf32>
    %cst_10 = arith.constant 3.200000e+01 : f32
    %14 = vector.broadcast %cst_10 : f32 to vector<8x1xf32>
    %15 = arith.divf %13, %14 : vector<8x1xf32>
    %cst_11 = arith.constant 9.99999974E-6 : f32
    %16 = vector.broadcast %cst_11 : f32 to vector<8x1xf32>
    %17 = arith.addf %15, %16 : vector<8x1xf32>
    %18 = math.rsqrt %17 : vector<8x1xf32>
    %19 = vector.broadcast %8 : vector<8x1xf32> to vector<8x32xf32>
    %20 = arith.subf %1, %19 : vector<8x32xf32>
    %21 = vector.broadcast %18 : vector<8x1xf32> to vector<8x32xf32>
    %22 = arith.mulf %20, %21 : vector<8x32xf32>
    %23 = vector.broadcast %3 : vector<1x32xf32> to vector<8x32xf32>
    %24 = arith.mulf %22, %23 : vector<8x32xf32>
    %25 = vector.broadcast %4 : vector<1x32xf32> to vector<8x32xf32>
    %26 = arith.addf %24, %25 : vector<8x32xf32>
    %27 = arith.truncf %26 : vector<8x32xf32> to vector<8x32xbf16>
    %c0_12 = arith.constant 0 : index
    %c0_13 = arith.constant 0 : index
    %28 = vector.load %arg5[%c0_12, %c0_13] : memref<32x96xbf16, #tpu.memory_space<vmem>>, vector<32x96xbf16>
    %cst_14 = arith.constant dense<0.000000e+00> : vector<8x96xf32>
    %29 = tpu.matmul %27, %28, %cst_14 {dimension_numbers = #tpu.dot_dimension_numbers<[1], [0], [0], [1], [0, 0, 1, 1], [], []>} : vector<8x32xbf16>, vector<32x96xbf16>, vector<8x96xf32> -> vector<8x96xf32>
    %c0_15 = arith.constant 0 : index
    %c0_16 = arith.constant 0 : index
    %30 = vector.load %arg6[%c0_15, %c0_16] : memref<1x96xf32, #tpu.memory_space<vmem>>, vector<1x96xf32>
    %31 = vector.broadcast %30 : vector<1x96xf32> to vector<8x96xf32>
    %32 = arith.addf %29, %31 : vector<8x96xf32>
    %33 = vector.extract_strided_slice %32 {offsets = [0, 0], sizes = [8, 32], strides = [1, 1]} : vector<8x96xf32> to vector<8x32xf32>
    %34 = vector.broadcast %2 : f32 to vector<8x32xf32>
    %35 = arith.mulf %33, %34 : vector<8x32xf32>
    %36 = arith.truncf %35 : vector<8x32xf32> to vector<8x32xbf16>
    %37 = vector.extract_strided_slice %32 {offsets = [0, 32], sizes = [8, 32], strides = [1, 1]} : vector<8x96xf32> to vector<8x32xf32>
    %38 = arith.truncf %37 : vector<8x32xf32> to vector<8x32xbf16>
    %39 = vector.extract_strided_slice %32 {offsets = [0, 64], sizes = [8, 32], strides = [1, 1]} : vector<8x96xf32> to vector<8x32xf32>
    %40 = arith.truncf %39 : vector<8x32xf32> to vector<8x32xbf16>
    %41 = vector.extract_strided_slice %36 {offsets = [0, 0], sizes = [8, 8], strides = [1, 1]} : vector<8x32xbf16> to vector<8x8xbf16>
    %42 = vector.extract_strided_slice %38 {offsets = [0, 0], sizes = [8, 8], strides = [1, 1]} : vector<8x32xbf16> to vector<8x8xbf16>
    %cst_17 = arith.constant dense<0.000000e+00> : vector<8x8xf32>
    %43 = tpu.matmul %41, %42, %cst_17 {dimension_numbers = #tpu.dot_dimension_numbers<[1], [1], [0], [0], [0, 0, 1, 0], [], []>} : vector<8x8xbf16>, vector<8x8xbf16>, vector<8x8xf32> -> vector<8x8xf32>
    %c0_18 = arith.constant 0 : index
    %c0_19 = arith.constant 0 : index
    %c0_20 = arith.constant 0 : index
    %c0_21 = arith.constant 0 : index
    %44 = vector.load %arg2[%c0_18, %c0_19, %c0_20, %c0_21] : memref<1x4x8x8xbf16, #tpu.memory_space<vmem>>, vector<1x1x8x8xbf16>
    %45 = vector.shape_cast %44 : vector<1x1x8x8xbf16> to vector<8x8xbf16>
    %46 = arith.extf %45 : vector<8x8xbf16> to vector<8x8xf32>
    %47 = arith.addf %43, %46 : vector<8x8xf32>
    %cst_22 = arith.constant dense<0xFF800000> : vector<8xf32>
    %48 = vector.multi_reduction <maximumf>, %47, %cst_22 [1] : vector<8x8xf32> to vector<8xf32>
    %49 = vector.shape_cast %48 : vector<8xf32> to vector<8x1xf32>
    %50 = vector.broadcast %49 : vector<8x1xf32> to vector<8x8xf32>
    %51 = arith.subf %47, %50 : vector<8x8xf32>
    %52 = math.exp %51 : vector<8x8xf32>
    %cst_23 = arith.constant dense<0.000000e+00> : vector<8xf32>
    %53 = vector.multi_reduction <add>, %52, %cst_23 [1] : vector<8x8xf32> to vector<8xf32>
    %54 = vector.shape_cast %53 : vector<8xf32> to vector<8x1xf32>
    %55 = tpu.reciprocal %54 {approx = true} : vector<8x1xf32> -> vector<8x1xf32>
    %56 = vector.broadcast %55 : vector<8x1xf32> to vector<8x8xf32>
    %57 = arith.mulf %52, %56 : vector<8x8xf32>
    %58 = arith.truncf %57 : vector<8x8xf32> to vector<8x8xbf16>
    %59 = vector.extract_strided_slice %40 {offsets = [0, 0], sizes = [8, 8], strides = [1, 1]} : vector<8x32xbf16> to vector<8x8xbf16>
    %cst_24 = arith.constant dense<0.000000e+00> : vector<8x8xf32>
    %60 = tpu.matmul %58, %59, %cst_24 {dimension_numbers = #tpu.dot_dimension_numbers<[1], [0], [0], [1], [0, 0, 1, 1], [], []>} : vector<8x8xbf16>, vector<8x8xbf16>, vector<8x8xf32> -> vector<8x8xf32>
    %61 = arith.truncf %60 : vector<8x8xf32> to vector<8x8xbf16>
    %c0_25 = arith.constant 0 : index
    %c0_26 = arith.constant 0 : index
    %62 = vector.load %arg16[%c0_25, %c0_26] : memref<8x32xbf16, #tpu.memory_space<vmem>>, vector<8x8xbf16>
    tpu.vector_store %arg16[%c0_25, %c0_26], %61 {strides = array<i32>} : memref<8x32xbf16, #tpu.memory_space<vmem>>, vector<8x8xbf16>,
    %63 = vector.extract_strided_slice %36 {offsets = [0, 8], sizes = [8, 8], strides = [1, 1]} : vector<8x32xbf16> to vector<8x8xbf16>
    %64 = vector.extract_strided_slice %38 {offsets = [0, 8], sizes = [8, 8], strides = [1, 1]} : vector<8x32xbf16> to vector<8x8xbf16>
    %cst_27 = arith.constant dense<0.000000e+00> : vector<8x8xf32>
    %65 = tpu.matmul %63, %64, %cst_27 {dimension_numbers = #tpu.dot_dimension_numbers<[1], [1], [0], [0], [0, 0, 1, 0], [], []>} : vector<8x8xbf16>, vector<8x8xbf16>, vector<8x8xf32> -> vector<8x8xf32>
    %c0_28 = arith.constant 0 : index
    %c1 = arith.constant 1 : index
    %c0_29 = arith.constant 0 : index
    %c0_30 = arith.constant 0 : index
    %66 = vector.load %arg2[%c0_28, %c1, %c0_29, %c0_30] : memref<1x4x8x8xbf16, #tpu.memory_space<vmem>>, vector<1x1x8x8xbf16>
    %67 = vector.shape_cast %66 : vector<1x1x8x8xbf16> to vector<8x8xbf16>
    %68 = arith.extf %67 : vector<8x8xbf16> to vector<8x8xf32>
    %69 = arith.addf %65, %68 : vector<8x8xf32>
    %cst_31 = arith.constant dense<0xFF800000> : vector<8xf32>
    %70 = vector.multi_reduction <maximumf>, %69, %cst_31 [1] : vector<8x8xf32> to vector<8xf32>
    %71 = vector.shape_cast %70 : vector<8xf32> to vector<8x1xf32>
    %72 = vector.broadcast %71 : vector<8x1xf32> to vector<8x8xf32>
    %73 = arith.subf %69, %72 : vector<8x8xf32>
    %74 = math.exp %73 : vector<8x8xf32>
    %cst_32 = arith.constant dense<0.000000e+00> : vector<8xf32>
    %75 = vector.multi_reduction <add>, %74, %cst_32 [1] : vector<8x8xf32> to vector<8xf32>
    %76 = vector.shape_cast %75 : vector<8xf32> to vector<8x1xf32>
    %77 = tpu.reciprocal %76 {approx = true} : vector<8x1xf32> -> vector<8x1xf32>
    %78 = vector.broadcast %77 : vector<8x1xf32> to vector<8x8xf32>
    %79 = arith.mulf %74, %78 : vector<8x8xf32>
    %80 = arith.truncf %79 : vector<8x8xf32> to vector<8x8xbf16>
    %81 = vector.extract_strided_slice %40 {offsets = [0, 8], sizes = [8, 8], strides = [1, 1]} : vector<8x32xbf16> to vector<8x8xbf16>
    %cst_33 = arith.constant dense<0.000000e+00> : vector<8x8xf32>
    %82 = tpu.matmul %80, %81, %cst_33 {dimension_numbers = #tpu.dot_dimension_numbers<[1], [0], [0], [1], [0, 0, 1, 1], [], []>} : vector<8x8xbf16>, vector<8x8xbf16>, vector<8x8xf32> -> vector<8x8xf32>
    %83 = arith.truncf %82 : vector<8x8xf32> to vector<8x8xbf16>
    %c0_34 = arith.constant 0 : index
    %c8 = arith.constant 8 : index
    %84 = vector.load %arg16[%c0_34, %c8] : memref<8x32xbf16, #tpu.memory_space<vmem>>, vector<8x8xbf16>
    tpu.vector_store %arg16[%c0_34, %c8], %83 {strides = array<i32>} : memref<8x32xbf16, #tpu.memory_space<vmem>>, vector<8x8xbf16>,
    %85 = vector.extract_strided_slice %36 {offsets = [0, 16], sizes = [8, 8], strides = [1, 1]} : vector<8x32xbf16> to vector<8x8xbf16>
    %86 = vector.extract_strided_slice %38 {offsets = [0, 16], sizes = [8, 8], strides = [1, 1]} : vector<8x32xbf16> to vector<8x8xbf16>
    %cst_35 = arith.constant dense<0.000000e+00> : vector<8x8xf32>
    %87 = tpu.matmul %85, %86, %cst_35 {dimension_numbers = #tpu.dot_dimension_numbers<[1], [1], [0], [0], [0, 0, 1, 0], [], []>} : vector<8x8xbf16>, vector<8x8xbf16>, vector<8x8xf32> -> vector<8x8xf32>
    %c0_36 = arith.constant 0 : index
    %c2 = arith.constant 2 : index
    %c0_37 = arith.constant 0 : index
    %c0_38 = arith.constant 0 : index
    %88 = vector.load %arg2[%c0_36, %c2, %c0_37, %c0_38] : memref<1x4x8x8xbf16, #tpu.memory_space<vmem>>, vector<1x1x8x8xbf16>
    %89 = vector.shape_cast %88 : vector<1x1x8x8xbf16> to vector<8x8xbf16>
    %90 = arith.extf %89 : vector<8x8xbf16> to vector<8x8xf32>
    %91 = arith.addf %87, %90 : vector<8x8xf32>
    %cst_39 = arith.constant dense<0xFF800000> : vector<8xf32>
    %92 = vector.multi_reduction <maximumf>, %91, %cst_39 [1] : vector<8x8xf32> to vector<8xf32>
    %93 = vector.shape_cast %92 : vector<8xf32> to vector<8x1xf32>
    %94 = vector.broadcast %93 : vector<8x1xf32> to vector<8x8xf32>
    %95 = arith.subf %91, %94 : vector<8x8xf32>
    %96 = math.exp %95 : vector<8x8xf32>
    %cst_40 = arith.constant dense<0.000000e+00> : vector<8xf32>
    %97 = vector.multi_reduction <add>, %96, %cst_40 [1] : vector<8x8xf32> to vector<8xf32>
    %98 = vector.shape_cast %97 : vector<8xf32> to vector<8x1xf32>
    %99 = tpu.reciprocal %98 {approx = true} : vector<8x1xf32> -> vector<8x1xf32>
    %100 = vector.broadcast %99 : vector<8x1xf32> to vector<8x8xf32>
    %101 = arith.mulf %96, %100 : vector<8x8xf32>
    %102 = arith.truncf %101 : vector<8x8xf32> to vector<8x8xbf16>
    %103 = vector.extract_strided_slice %40 {offsets = [0, 16], sizes = [8, 8], strides = [1, 1]} : vector<8x32xbf16> to vector<8x8xbf16>
    %cst_41 = arith.constant dense<0.000000e+00> : vector<8x8xf32>
    %104 = tpu.matmul %102, %103, %cst_41 {dimension_numbers = #tpu.dot_dimension_numbers<[1], [0], [0], [1], [0, 0, 1, 1], [], []>} : vector<8x8xbf16>, vector<8x8xbf16>, vector<8x8xf32> -> vector<8x8xf32>
    %105 = arith.truncf %104 : vector<8x8xf32> to vector<8x8xbf16>
    %c0_42 = arith.constant 0 : index
    %c16 = arith.constant 16 : index
    %106 = vector.load %arg16[%c0_42, %c16] : memref<8x32xbf16, #tpu.memory_space<vmem>>, vector<8x8xbf16>
    tpu.vector_store %arg16[%c0_42, %c16], %105 {strides = array<i32>} : memref<8x32xbf16, #tpu.memory_space<vmem>>, vector<8x8xbf16>,
    %107 = vector.extract_strided_slice %36 {offsets = [0, 24], sizes = [8, 8], strides = [1, 1]} : vector<8x32xbf16> to vector<8x8xbf16>
    %108 = vector.extract_strided_slice %38 {offsets = [0, 24], sizes = [8, 8], strides = [1, 1]} : vector<8x32xbf16> to vector<8x8xbf16>
    %cst_43 = arith.constant dense<0.000000e+00> : vector<8x8xf32>
    %109 = tpu.matmul %107, %108, %cst_43 {dimension_numbers = #tpu.dot_dimension_numbers<[1], [1], [0], [0], [0, 0, 1, 0], [], []>} : vector<8x8xbf16>, vector<8x8xbf16>, vector<8x8xf32> -> vector<8x8xf32>
    %c0_44 = arith.constant 0 : index
    %c3 = arith.constant 3 : index
    %c0_45 = arith.constant 0 : index
    %c0_46 = arith.constant 0 : index
    %110 = vector.load %arg2[%c0_44, %c3, %c0_45, %c0_46] : memref<1x4x8x8xbf16, #tpu.memory_space<vmem>>, vector<1x1x8x8xbf16>
    %111 = vector.shape_cast %110 : vector<1x1x8x8xbf16> to vector<8x8xbf16>
    %112 = arith.extf %111 : vector<8x8xbf16> to vector<8x8xf32>
    %113 = arith.addf %109, %112 : vector<8x8xf32>
    %cst_47 = arith.constant dense<0xFF800000> : vector<8xf32>
    %114 = vector.multi_reduction <maximumf>, %113, %cst_47 [1] : vector<8x8xf32> to vector<8xf32>
    %115 = vector.shape_cast %114 : vector<8xf32> to vector<8x1xf32>
    %116 = vector.broadcast %115 : vector<8x1xf32> to vector<8x8xf32>
    %117 = arith.subf %113, %116 : vector<8x8xf32>
    %118 = math.exp %117 : vector<8x8xf32>
    %cst_48 = arith.constant dense<0.000000e+00> : vector<8xf32>
    %119 = vector.multi_reduction <add>, %118, %cst_48 [1] : vector<8x8xf32> to vector<8xf32>
    %120 = vector.shape_cast %119 : vector<8xf32> to vector<8x1xf32>
    %121 = tpu.reciprocal %120 {approx = true} : vector<8x1xf32> -> vector<8x1xf32>
    %122 = vector.broadcast %121 : vector<8x1xf32> to vector<8x8xf32>
    %123 = arith.mulf %118, %122 : vector<8x8xf32>
    %124 = arith.truncf %123 : vector<8x8xf32> to vector<8x8xbf16>
    %125 = vector.extract_strided_slice %40 {offsets = [0, 24], sizes = [8, 8], strides = [1, 1]} : vector<8x32xbf16> to vector<8x8xbf16>
    %cst_49 = arith.constant dense<0.000000e+00> : vector<8x8xf32>
    %126 = tpu.matmul %124, %125, %cst_49 {dimension_numbers = #tpu.dot_dimension_numbers<[1], [0], [0], [1], [0, 0, 1, 1], [], []>} : vector<8x8xbf16>, vector<8x8xbf16>, vector<8x8xf32> -> vector<8x8xf32>
    %127 = arith.truncf %126 : vector<8x8xf32> to vector<8x8xbf16>
    %c0_50 = arith.constant 0 : index
    %c24 = arith.constant 24 : index
    %128 = vector.load %arg16[%c0_50, %c24] : memref<8x32xbf16, #tpu.memory_space<vmem>>, vector<8x8xbf16>
    tpu.vector_store %arg16[%c0_50, %c24], %127 {strides = array<i32>} : memref<8x32xbf16, #tpu.memory_space<vmem>>, vector<8x8xbf16>,
    %c0_51 = arith.constant 0 : index
    %c0_52 = arith.constant 0 : index
    %129 = vector.load %arg16[%c0_51, %c0_52] : memref<8x32xbf16, #tpu.memory_space<vmem>>, vector<8x32xbf16>
    %c0_53 = arith.constant 0 : index
    %c0_54 = arith.constant 0 : index
    %130 = vector.load %arg7[%c0_53, %c0_54] : memref<32x32xbf16, #tpu.memory_space<vmem>>, vector<32x32xbf16>
    %cst_55 = arith.constant dense<0.000000e+00> : vector<8x32xf32>
    %131 = tpu.matmul %129, %130, %cst_55 {dimension_numbers = #tpu.dot_dimension_numbers<[1], [0], [0], [1], [0, 0, 1, 1], [], []>} : vector<8x32xbf16>, vector<32x32xbf16>, vector<8x32xf32> -> vector<8x32xf32>
    %c0_56 = arith.constant 0 : index
    %c0_57 = arith.constant 0 : index
    %132 = vector.load %arg8[%c0_56, %c0_57] : memref<1x32xf32, #tpu.memory_space<vmem>>, vector<1x32xf32>
    %133 = vector.broadcast %132 : vector<1x32xf32> to vector<8x32xf32>
    %134 = arith.addf %131, %133 : vector<8x32xf32>
    %135 = arith.addf %1, %134 : vector<8x32xf32>
    %c0_58 = arith.constant 0 : index
    %c0_59 = arith.constant 0 : index
    %136 = vector.load %arg9[%c0_58, %c0_59] : memref<1x32xf32, #tpu.memory_space<vmem>>, vector<1x32xf32>
    %c0_60 = arith.constant 0 : index
    %c0_61 = arith.constant 0 : index
    %137 = vector.load %arg10[%c0_60, %c0_61] : memref<1x32xf32, #tpu.memory_space<vmem>>, vector<1x32xf32>
    %cst_62 = arith.constant dense<0.000000e+00> : vector<8xf32>
    %138 = vector.multi_reduction <add>, %135, %cst_62 [1] : vector<8x32xf32> to vector<8xf32>
    %139 = vector.shape_cast %138 : vector<8xf32> to vector<8x1xf32>
    %cst_63 = arith.constant 3.200000e+01 : f32
    %140 = vector.broadcast %cst_63 : f32 to vector<8x1xf32>
    %141 = arith.divf %139, %140 : vector<8x1xf32>
    %142 = vector.broadcast %141 : vector<8x1xf32> to vector<8x32xf32>
    %143 = arith.subf %135, %142 : vector<8x32xf32>
    %144 = arith.mulf %143, %143 : vector<8x32xf32>
    %cst_64 = arith.constant dense<0.000000e+00> : vector<8xf32>
    %145 = vector.multi_reduction <add>, %144, %cst_64 [1] : vector<8x32xf32> to vector<8xf32>
    %146 = vector.shape_cast %145 : vector<8xf32> to vector<8x1xf32>
    %cst_65 = arith.constant 3.200000e+01 : f32
    %147 = vector.broadcast %cst_65 : f32 to vector<8x1xf32>
    %148 = arith.divf %146, %147 : vector<8x1xf32>
    %cst_66 = arith.constant 9.99999974E-6 : f32
    %149 = vector.broadcast %cst_66 : f32 to vector<8x1xf32>
    %150 = arith.addf %148, %149 : vector<8x1xf32>
    %151 = math.rsqrt %150 : vector<8x1xf32>
    %152 = vector.broadcast %141 : vector<8x1xf32> to vector<8x32xf32>
    %153 = arith.subf %135, %152 : vector<8x32xf32>
    %154 = vector.broadcast %151 : vector<8x1xf32> to vector<8x32xf32>
    %155 = arith.mulf %153, %154 : vector<8x32xf32>
    %156 = vector.broadcast %136 : vector<1x32xf32> to vector<8x32xf32>
    %157 = arith.mulf %155, %156 : vector<8x32xf32>
    %158 = vector.broadcast %137 : vector<1x32xf32> to vector<8x32xf32>
    %159 = arith.addf %157, %158 : vector<8x32xf32>
    %160 = arith.truncf %159 : vector<8x32xf32> to vector<8x32xbf16>
    %c0_67 = arith.constant 0 : index
    %c0_68 = arith.constant 0 : index
    %161 = vector.load %arg11[%c0_67, %c0_68] : memref<32x64xbf16, #tpu.memory_space<vmem>>, vector<32x64xbf16>
    %cst_69 = arith.constant dense<0.000000e+00> : vector<8x64xf32>
    %162 = tpu.matmul %160, %161, %cst_69 {dimension_numbers = #tpu.dot_dimension_numbers<[1], [0], [0], [1], [0, 0, 1, 1], [], []>} : vector<8x32xbf16>, vector<32x64xbf16>, vector<8x64xf32> -> vector<8x64xf32>
    %c0_70 = arith.constant 0 : index
    %c0_71 = arith.constant 0 : index
    %163 = vector.load %arg12[%c0_70, %c0_71] : memref<1x64xf32, #tpu.memory_space<vmem>>, vector<1x64xf32>
    %164 = vector.broadcast %163 : vector<1x64xf32> to vector<8x64xf32>
    %165 = arith.addf %162, %164 : vector<8x64xf32>
    %cst_72 = arith.constant 5.000000e-01 : f32
    %166 = vector.broadcast %cst_72 : f32 to vector<8x64xf32>
    %167 = arith.mulf %166, %165 : vector<8x64xf32>
    %cst_73 = arith.constant 2.000000e+00 : f32
    %168 = math.sqrt %cst_73 : f32
    %169 = vector.broadcast %168 : f32 to vector<8x64xf32>
    %170 = arith.divf %165, %169 : vector<8x64xf32>
    %171 = math.erf %170 : vector<8x64xf32>
    %cst_74 = arith.constant 1.000000e+00 : f32
    %172 = vector.broadcast %cst_74 : f32 to vector<8x64xf32>
    %173 = arith.addf %172, %171 : vector<8x64xf32>
    %174 = arith.mulf %167, %173 : vector<8x64xf32>
    %175 = arith.truncf %174 : vector<8x64xf32> to vector<8x64xbf16>
    %c0_75 = arith.constant 0 : index
    %c0_76 = arith.constant 0 : index
    %176 = vector.load %arg13[%c0_75, %c0_76] : memref<64x32xbf16, #tpu.memory_space<vmem>>, vector<64x32xbf16>
    %cst_77 = arith.constant dense<0.000000e+00> : vector<8x32xf32>
    %177 = tpu.matmul %175, %176, %cst_77 {dimension_numbers = #tpu.dot_dimension_numbers<[1], [0], [0], [1], [0, 0, 1, 1], [], []>} : vector<8x64xbf16>, vector<64x32xbf16>, vector<8x32xf32> -> vector<8x32xf32>
    %c0_78 = arith.constant 0 : index
    %c0_79 = arith.constant 0 : index
    %178 = vector.load %arg14[%c0_78, %c0_79] : memref<1x32xf32, #tpu.memory_space<vmem>>, vector<1x32xf32>
    %179 = vector.broadcast %178 : vector<1x32xf32> to vector<8x32xf32>
    %180 = arith.addf %177, %179 : vector<8x32xf32>
    %181 = arith.addf %135, %180 : vector<8x32xf32>
    %c0_80 = arith.constant 0 : index
    %c0_81 = arith.constant 0 : index
    %c0_82 = arith.constant 0 : index
    %182 = vector.load %arg15[%c0_80, %c0_81, %c0_82] : memref<1x8x32xf32, #tpu.memory_space<vmem>>, vector<1x8x32xf32>
    %183 = vector.shape_cast %182 : vector<1x8x32xf32> to vector<8x32xf32>
    %184 = vector.shape_cast %181 : vector<8x32xf32> to vector<1x8x32xf32>
    tpu.vector_store %arg15[%c0_80, %c0_81, %c0_82], %184 {strides = array<i32>} : memref<1x8x32xf32, #tpu.memory_space<vmem>>, vector<1x8x32xf32>,
    return
  }
  func.func @transform_0(%arg0: i32) -> (i32, i32, i32) {
    %c0_i32 = arith.constant 0 : i32
    %c0_i32_0 = arith.constant 0 : i32
    %c0_i32_1 = arith.constant 0 : i32
    return %arg0, %c0_i32, %c0_i32_0 : i32, i32, i32
  }
  func.func @transform_1(%arg0: i32) -> (i32, i32, i32, i32) {
    %c0_i32 = arith.constant 0 : i32
    %c0_i32_0 = arith.constant 0 : i32
    %c0_i32_1 = arith.constant 0 : i32
    %c0_i32_2 = arith.constant 0 : i32
    return %arg0, %c0_i32, %c0_i32_0, %c0_i32_1 : i32, i32, i32, i32
  }
  func.func @transform_2(%arg0: i32) -> (i32, i32) {
    %c0_i32 = arith.constant 0 : i32
    %c0_i32_0 = arith.constant 0 : i32
    %c0_i32_1 = arith.constant 0 : i32
    return %c0_i32, %c0_i32_0 : i32, i32
  }
  func.func @transform_3(%arg0: i32) -> (i32, i32) {
    %c0_i32 = arith.constant 0 : i32
    %c0_i32_0 = arith.constant 0 : i32
    %c0_i32_1 = arith.constant 0 : i32
    return %c0_i32, %c0_i32_0 : i32, i32
  }
  func.func @transform_4(%arg0: i32) -> (i32, i32) {
    %c0_i32 = arith.constant 0 : i32
    %c0_i32_0 = arith.constant 0 : i32
    %c0_i32_1 = arith.constant 0 : i32
    return %c0_i32, %c0_i32_0 : i32, i32
  }
  func.func @transform_5(%arg0: i32) -> (i32, i32) {
    %c0_i32 = arith.constant 0 : i32
    %c0_i32_0 = arith.constant 0 : i32
    %c0_i32_1 = arith.constant 0 : i32
    return %c0_i32, %c0_i32_0 : i32, i32
  }
  func.func @transform_6(%arg0: i32) -> (i32, i32) {
    %c0_i32 = arith.constant 0 : i32
    %c0_i32_0 = arith.constant 0 : i32
    %c0_i32_1 = arith.constant 0 : i32
    return %c0_i32, %c0_i32_0 : i32, i32
  }
  func.func @transform_7(%arg0: i32) -> (i32, i32) {
    %c0_i32 = arith.constant 0 : i32
    %c0_i32_0 = arith.constant 0 : i32
    %c0_i32_1 = arith.constant 0 : i32
    return %c0_i32, %c0_i32_0 : i32, i32
  }
  func.func @transform_8(%arg0: i32) -> (i32, i32) {
    %c0_i32 = arith.constant 0 : i32
    %c0_i32_0 = arith.constant 0 : i32
    %c0_i32_1 = arith.constant 0 : i32
    return %c0_i32, %c0_i32_0 : i32, i32
  }
  func.func @transform_9(%arg0: i32) -> (i32, i32) {
    %c0_i32 = arith.constant 0 : i32
    %c0_i32_0 = arith.constant 0 : i32
    %c0_i32_1 = arith.constant 0 : i32
    return %c0_i32, %c0_i32_0 : i32, i32
  }
  func.func @transform_10(%arg0: i32) -> (i32, i32) {
    %c0_i32 = arith.constant 0 : i32
    %c0_i32_0 = arith.constant 0 : i32
    %c0_i32_1 = arith.constant 0 : i32
    return %c0_i32, %c0_i32_0 : i32, i32
  }
  func.func @transform_11(%arg0: i32) -> (i32, i32) {
    %c0_i32 = arith.constant 0 : i32
    %c0_i32_0 = arith.constant 0 : i32
    %c0_i32_1 = arith.constant 0 : i32
    return %c0_i32, %c0_i32_0 : i32, i32
  }
  func.func @transform_12(%arg0: i32) -> (i32, i32) {
    %c0_i32 = arith.constant 0 : i32
    %c0_i32_0 = arith.constant 0 : i32
    %c0_i32_1 = arith.constant 0 : i32
    return %c0_i32, %c0_i32_0 : i32, i32
  }
  func.func @transform_13(%arg0: i32) -> (i32, i32) {
    %c0_i32 = arith.constant 0 : i32
    %c0_i32_0 = arith.constant 0 : i32
    %c0_i32_1 = arith.constant 0 : i32
    return %c0_i32, %c0_i32_0 : i32, i32
  }
  func.func @transform_14(%arg0: i32) -> (i32, i32, i32) {
    %c0_i32 = arith.constant 0 : i32
    %c0_i32_0 = arith.constant 0 : i32
    %c0_i32_1 = arith.constant 0 : i32
    return %arg0, %c0_i32, %c0_i32_0 : i32, i32, i32
  }
}

module attributes {stable_mosaic.version = 11 : i64} {
  func.func @encoder_layer_kernel(%arg0: i32, %arg1: memref<1x8x32xf32, #tpu.memory_space<vmem>>, %arg2: memref<1x4x8x8xbf16, #tpu.memory_space<vmem>>, %arg3: memref<1x32xf32, #tpu.memory_space<vmem>>, %arg4: memref<1x32xf32, #tpu.memory_space<vmem>>, %arg5: memref<32x96xbf16, #tpu.memory_space<vmem>>, %arg6: memref<1x96xf32, #tpu.memory_space<vmem>>, %arg7: memref<32x32xbf16, #tpu.memory_space<vmem>>, %arg8: memref<1x32xf32, #tpu.memory_space<vmem>>, %arg9: memref<1x32xf32, #tpu.memory_space<vmem>>, %arg10: memref<1x32xf32, #tpu.memory_space<vmem>>, %arg11: memref<32x64xbf16, #tpu.memory_space<vmem>>, %arg12: memref<1x64xf32, #tpu.memory_space<vmem>>, %arg13: memref<64x32xbf16, #tpu.memory_space<vmem>>, %arg14: memref<1x32xf32, #tpu.memory_space<vmem>>, %arg15: memref<1x8x32xf32, #tpu.memory_space<vmem>>, %arg16: memref<8x32xbf16, #tpu.memory_space<vmem>>) attributes {dimension_semantics = [#tpu.dimension_semantics<parallel>], iteration_bounds = array<i64: 2>, scalar_prefetch = 0 : i64, scratch_operands = 1 : i64, tpu.core_type = #tpu.core_type<tc>, window_params = [{transform_indices = @transform_0, window_bounds = array<i64: 1, 8, 32>}, {transform_indices = @transform_1, window_bounds = array<i64: 1, 4, 8, 8>}, {pipeline_mode = #tpu.pipeline_mode<synchronous>, transform_indices = @transform_2, window_bounds = array<i64: 1, 32>}, {pipeline_mode = #tpu.pipeline_mode<synchronous>, transform_indices = @transform_3, window_bounds = array<i64: 1, 32>}, {pipeline_mode = #tpu.pipeline_mode<synchronous>, transform_indices = @transform_4, window_bounds = array<i64: 32, 96>}, {pipeline_mode = #tpu.pipeline_mode<synchronous>, transform_indices = @transform_5, window_bounds = array<i64: 1, 96>}, {pipeline_mode = #tpu.pipeline_mode<synchronous>, transform_indices = @transform_6, window_bounds = array<i64: 32, 32>}, {pipeline_mode = #tpu.pipeline_mode<synchronous>, transform_indices = @transform_7, window_bounds = array<i64: 1, 32>}, {pipeline_mode = #tpu.pipeline_mode<synchronous>, transform_indices = @transform_8, window_bounds = array<i64: 1, 32>}, {pipeline_mode = #tpu.pipeline_mode<synchronous>, transform_indices = @transform_9, window_bounds = array<i64: 1, 32>}, {pipeline_mode = #tpu.pipeline_mode<synchronous>, transform_indices = @transform_10, window_bounds = array<i64: 32, 64>}, {pipeline_mode = #tpu.pipeline_mode<synchronous>, transform_indices = @transform_11, window_bounds = array<i64: 1, 64>}, {pipeline_mode = #tpu.pipeline_mode<synchronous>, transform_indices = @transform_12, window_bounds = array<i64: 64, 32>}, {pipeline_mode = #tpu.pipeline_mode<synchronous>, transform_indices = @transform_13, window_bounds = array<i64: 1, 32>}, {transform_indices = @transform_14, window_bounds = array<i64: 1, 8, 32>}]} {
    %c0 = arith.constant 0 : index
    %c0_0 = arith.constant 0 : index
    %c0_1 = arith.constant 0 : index
    %0 = vector.load %arg1[%c0, %c0_0, %c0_1] : memref<1x8x32xf32, #tpu.memory_space<vmem>>, vector<1x8x32xf32>
    %1 = vector.shape_cast %0 : vector<1x8x32xf32> to vector<8x32xf32>
    %cst = arith.constant 8.000000e+00 : f32
    %cst_2 = arith.constant -5.000000e-01 : f32
    %2 = math.powf %cst, %cst_2 : f32
    %c0_3 = arith.constant 0 : index
    %c0_4 = arith.constant 0 : index
    %3 = vector.load %arg3[%c0_3, %c0_4] : memref<1x32xf32, #tpu.memory_space<vmem>>, vector<1x32xf32>
    %c0_5 = arith.constant 0 : index
    %c0_6 = arith.constant 0 : index
    %4 = vector.load %arg4[%c0_5, %c0_6] : memref<1x32xf32, #tpu.memory_space<vmem>>, vector<1x32xf32>
    %cst_7 = arith.constant dense<0.000000e+00> : vector<8xf32>
    %5 = vector.multi_reduction <add>, %1, %cst_7 [1] : vector<8x32xf32> to vector<8xf32>
    %6 = vector.shape_cast %5 : vector<8xf32> to vector<8x1xf32>
    %cst_8 = arith.constant 3.200000e+01 : f32
    %7 = vector.broadcast %cst_8 : f32 to vector<8x1xf32>
    %8 = arith.divf %6, %7 : vector<8x1xf32>
    %9 = vector.broadcast %8 : vector<8x1xf32> to vector<8x32xf32>
    %10 = arith.subf %1, %9 : vector<8x32xf32>
    %11 = arith.mulf %10, %10 : vector<8x32xf32>
    %cst_9 = arith.constant dense<0.000000e+00> : vector<8xf32>
    %12 = vector.multi_reduction <add>, %11, %cst_9 [1] : vector<8x32xf32> to vector<8xf32>
    %13 = vector.shape_cast %12 : vector<8xf32> to vector<8x1xf32>
    %cst_10 = arith.constant 3.200000e+01 : f32
    %14 = vector.broadcast %cst_10 : f32 to vector<8x1xf32>
    %15 = arith.divf %13, %14 : vector<8x1xf32>
    %cst_11 = arith.constant 9.99999974E-6 : f32
    %16 = vector.broadcast %cst_11 : f32 to vector<8x1xf32>
    %17 = arith.addf %15, %16 : vector<8x1xf32>
    %18 = math.rsqrt %17 : vector<8x1xf32>
    %19 = vector.broadcast %8 : vector<8x1xf32> to vector<8x32xf32>
    %20 = arith.subf %1, %19 : vector<8x32xf32>
    %21 = vector.broadcast %18 : vector<8x1xf32> to vector<8x32xf32>
    %22 = arith.mulf %20, %21 : vector<8x32xf32>
    %23 = vector.broadcast %3 : vector<1x32xf32> to vector<8x32xf32>
    %24 = arith.mulf %22, %23 : vector<8x32xf32>
    %25 = vector.broadcast %4 : vector<1x32xf32> to vector<8x32xf32>
    %26 = arith.addf %24, %25 : vector<8x32xf32>
    %27 = arith.truncf %26 : vector<8x32xf32> to vector<8x32xbf16>
    %c0_12 = arith.constant 0 : index
    %c0_13 = arith.constant 0 : index
    %28 = vector.load %arg5[%c0_12, %c0_13] : memref<32x96xbf16, #tpu.memory_space<vmem>>, vector<32x96xbf16>
    %cst_14 = arith.constant dense<0.000000e+00> : vector<8x96xf32>
    %29 = tpu.matmul %27, %28, %cst_14 {dimension_numbers = #tpu.dot_dimension_numbers<[1], [0], [0], [1], [0, 0, 1, 1], [], []>} : vector<8x32xbf16>, vector<32x96xbf16>, vector<8x96xf32> -> vector<8x96xf32>
    %c0_15 = arith.constant 0 : index
    %c0_16 = arith.constant 0 : index
    %30 = vector.load %arg6[%c0_15, %c0_16] : memref<1x96xf32, #tpu.memory_space<vmem>>, vector<1x96xf32>
    %31 = vector.broadcast %30 : vector<1x96xf32> to vector<8x96xf32>
    %32 = arith.addf %29, %31 : vector<8x96xf32>
    %33 = vector.extract_strided_slice %32 {offsets = [0, 0], sizes = [8, 32], strides = [1, 1]} : vector<8x96xf32> to vector<8x32xf32>
    %34 = vector.broadcast %2 : f32 to vector<8x32xf32>
    %35 = arith.mulf %33, %34 : vector<8x32xf32>
    %36 = arith.truncf %35 : vector<8x32xf32> to vector<8x32xbf16>
    %37 = vector.extract_strided_slice %32 {offsets = [0, 32], sizes = [8, 32], strides = [1, 1]} : vector<8x96xf32> to vector<8x32xf32>
    %38 = arith.truncf %37 : vector<8x32xf32> to vector<8x32xbf16>
    %39 = vector.extract_strided_slice %32 {offsets = [0, 64], sizes = [8, 32], strides = [1, 1]} : vector<8x96xf32> to vector<8x32xf32>
    %40 = arith.truncf %39 : vector<8x32xf32> to vector<8x32xbf16>
    %41 = vector.extract_strided_slice %36 {offsets = [0, 0], sizes = [8, 8], strides = [1, 1]} : vector<8x32xbf16> to vector<8x8xbf16>
    %42 = vector.extract_strided_slice %38 {offsets = [0, 0], sizes = [8, 8], strides = [1, 1]} : vector<8x32xbf16> to vector<8x8xbf16>
    %cst_17 = arith.constant dense<0.000000e+00> : vector<8x8xf32>
    %43 = tpu.matmul %41, %42, %cst_17 {dimension_numbers = #tpu.dot_dimension_numbers<[1], [1], [0], [0], [0, 0, 1, 0], [], []>} : vector<8x8xbf16>, vector<8x8xbf16>, vector<8x8xf32> -> vector<8x8xf32>
    %c0_18 = arith.constant 0 : index
    %c0_19 = arith.constant 0 : index
    %c0_20 = arith.constant 0 : index
    %c0_21 = arith.constant 0 : index
    %44 = vector.load %arg2[%c0_18, %c0_19, %c0_20, %c0_21] : memref<1x4x8x8xbf16, #tpu.memory_space<vmem>>, vector<1x1x8x8xbf16>
    %45 = vector.shape_cast %44 : vector<1x1x8x8xbf16> to vector<8x8xbf16>
    %46 = arith.extf %45 : vector<8x8xbf16> to vector<8x8xf32>
    %47 = arith.addf %43, %46 : vector<8x8xf32>
    %cst_22 = arith.constant dense<0xFF800000> : vector<8xf32>
    %48 = vector.multi_reduction <maximumf>, %47, %cst_22 [1] : vector<8x8xf32> to vector<8xf32>
    %49 = vector.shape_cast %48 : vector<8xf32> to vector<8x1xf32>
    %50 = vector.broadcast %49 : vector<8x1xf32> to vector<8x8xf32>
    %51 = arith.subf %47, %50 : vector<8x8xf32>
    %52 = math.exp %51 : vector<8x8xf32>
    %cst_23 = arith.constant dense<0.000000e+00> : vector<8xf32>
    %53 = vector.multi_reduction <add>, %52, %cst_23 [1] : vector<8x8xf32> to vector<8xf32>
    %54 = vector.shape_cast %53 : vector<8xf32> to vector<8x1xf32>
    %55 = tpu.reciprocal %54 {approx = true} : vector<8x1xf32> -> vector<8x1xf32>
    %56 = vector.broadcast %55 : vector<8x1xf32> to vector<8x8xf32>
    %57 = arith.mulf %52, %56 : vector<8x8xf32>
    %58 = arith.truncf %57 : vector<8x8xf32> to vector<8x8xbf16>
    %59 = vector.extract_strided_slice %40 {offsets = [0, 0], sizes = [8, 8], strides = [1, 1]} : vector<8x32xbf16> to vector<8x8xbf16>
    %cst_24 = arith.constant dense<0.000000e+00> : vector<8x8xf32>
    %60 = tpu.matmul %58, %59, %cst_24 {dimension_numbers = #tpu.dot_dimension_numbers<[1], [0], [0], [1], [0, 0, 1, 1], [], []>} : vector<8x8xbf16>, vector<8x8xbf16>, vector<8x8xf32> -> vector<8x8xf32>
    %61 = arith.truncf %60 : vector<8x8xf32> to vector<8x8xbf16>
    %c0_25 = arith.constant 0 : index
    %c0_26 = arith.constant 0 : index
    %62 = vector.load %arg16[%c0_25, %c0_26] : memref<8x32xbf16, #tpu.memory_space<vmem>>, vector<8x8xbf16>
    tpu.vector_store %arg16[%c0_25, %c0_26], %61 {strides = array<i32>} : memref<8x32xbf16, #tpu.memory_space<vmem>>, vector<8x8xbf16>,
    %63 = vector.extract_strided_slice %36 {offsets = [0, 8], sizes = [8, 8], strides = [1, 1]} : vector<8x32xbf16> to vector<8x8xbf16>
    %64 = vector.extract_strided_slice %38 {offsets = [0, 8], sizes = [8, 8], strides = [1, 1]} : vector<8x32xbf16> to vector<8x8xbf16>
    %cst_27 = arith.constant dense<0.000000e+00> : vector<8x8xf32>
    %65 = tpu.matmul %63, %64, %cst_27 {dimension_numbers = #tpu.dot_dimension_numbers<[1], [1], [0], [0], [0, 0, 1, 0], [], []>} : vector<8x8xbf16>, vector<8x8xbf16>, vector<8x8xf32> -> vector<8x8xf32>
    %c0_28 = arith.constant 0 : index
    %c1 = arith.constant 1 : index
    %c0_29 = arith.constant 0 : index
    %c0_30 = arith.constant 0 : index
    %66 = vector.load %arg2[%c0_28, %c1, %c0_29, %c0_30] : memref<1x4x8x8xbf16, #tpu.memory_space<vmem>>, vector<1x1x8x8xbf16>
    %67 = vector.shape_cast %66 : vector<1x1x8x8xbf16> to vector<8x8xbf16>
    %68 = arith.extf %67 : vector<8x8xbf16> to vector<8x8xf32>
    %69 = arith.addf %65, %68 : vector<8x8xf32>
    %cst_31 = arith.constant dense<0xFF800000> : vector<8xf32>
    %70 = vector.multi_reduction <maximumf>, %69, %cst_31 [1] : vector<8x8xf32> to vector<8xf32>
    %71 = vector.shape_cast %70 : vector<8xf32> to vector<8x1xf32>
    %72 = vector.broadcast %71 : vector<8x1xf32> to vector<8x8xf32>
    %73 = arith.subf %69, %72 : vector<8x8xf32>
    %74 = math.exp %73 : vector<8x8xf32>
    %cst_32 = arith.constant dense<0.000000e+00> : vector<8xf32>
    %75 = vector.multi_reduction <add>, %74, %cst_32 [1] : vector<8x8xf32> to vector<8xf32>
    %76 = vector.shape_cast %75 : vector<8xf32> to vector<8x1xf32>
    %77 = tpu.reciprocal %76 {approx = true} : vector<8x1xf32> -> vector<8x1xf32>
    %78 = vector.broadcast %77 : vector<8x1xf32> to vector<8x8xf32>
    %79 = arith.mulf %74, %78 : vector<8x8xf32>
    %80 = arith.truncf %79 : vector<8x8xf32> to vector<8x8xbf16>
    %81 = vector.extract_strided_slice %40 {offsets = [0, 8], sizes = [8, 8], strides = [1, 1]} : vector<8x32xbf16> to vector<8x8xbf16>
    %cst_33 = arith.constant dense<0.000000e+00> : vector<8x8xf32>
    %82 = tpu.matmul %80, %81, %cst_33 {dimension_numbers = #tpu.dot_dimension_numbers<[1], [0], [0], [1], [0, 0, 1, 1], [], []>} : vector<8x8xbf16>, vector<8x8xbf16>, vector<8x8xf32> -> vector<8x8xf32>
    %83 = arith.truncf %82 : vector<8x8xf32> to vector<8x8xbf16>
    %c0_34 = arith.constant 0 : index
    %c8 = arith.constant 8 : index
    %84 = vector.load %arg16[%c0_34, %c8] : memref<8x32xbf16, #tpu.memory_space<vmem>>, vector<8x8xbf16>
    tpu.vector_store %arg16[%c0_34, %c8], %83 {strides = array<i32>} : memref<8x32xbf16, #tpu.memory_space<vmem>>, vector<8x8xbf16>,
    %85 = vector.extract_strided_slice %36 {offsets = [0, 16], sizes = [8, 8], strides = [1, 1]} : vector<8x32xbf16> to vector<8x8xbf16>
    %86 = vector.extract_strided_slice %38 {offsets = [0, 16], sizes = [8, 8], strides = [1, 1]} : vector<8x32xbf16> to vector<8x8xbf16>
    %cst_35 = arith.constant dense<0.000000e+00> : vector<8x8xf32>
    %87 = tpu.matmul %85, %86, %cst_35 {dimension_numbers = #tpu.dot_dimension_numbers<[1], [1], [0], [0], [0, 0, 1, 0], [], []>} : vector<8x8xbf16>, vector<8x8xbf16>, vector<8x8xf32> -> vector<8x8xf32>
    %c0_36 = arith.constant 0 : index
    %c2 = arith.constant 2 : index
    %c0_37 = arith.constant 0 : index
    %c0_38 = arith.constant 0 : index
    %88 = vector.load %arg2[%c0_36, %c2, %c0_37, %c0_38] : memref<1x4x8x8xbf16, #tpu.memory_space<vmem>>, vector<1x1x8x8xbf16>
    %89 = vector.shape_cast %88 : vector<1x1x8x8xbf16> to vector<8x8xbf16>
    %90 = arith.extf %89 : vector<8x8xbf16> to vector<8x8xf32>
    %91 = arith.addf %87, %90 : vector<8x8xf32>
    %cst_39 = arith.constant dense<0xFF800000> : vector<8xf32>
    %92 = vector.multi_reduction <maximumf>, %91, %cst_39 [1] : vector<8x8xf32> to vector<8xf32>
    %93 = vector.shape_cast %92 : vector<8xf32> to vector<8x1xf32>
    %94 = vector.broadcast %93 : vector<8x1xf32> to vector<8x8xf32>
    %95 = arith.subf %91, %94 : vector<8x8xf32>
    %96 = math.exp %95 : vector<8x8xf32>
    %cst_40 = arith.constant dense<0.000000e+00> : vector<8xf32>
    %97 = vector.multi_reduction <add>, %96, %cst_40 [1] : vector<8x8xf32> to vector<8xf32>
    %98 = vector.shape_cast %97 : vector<8xf32> to vector<8x1xf32>
    %99 = tpu.reciprocal %98 {approx = true} : vector<8x1xf32> -> vector<8x1xf32>
    %100 = vector.broadcast %99 : vector<8x1xf32> to vector<8x8xf32>
    %101 = arith.mulf %96, %100 : vector<8x8xf32>
    %102 = arith.truncf %101 : vector<8x8xf32> to vector<8x8xbf16>
    %103 = vector.extract_strided_slice %40 {offsets = [0, 16], sizes = [8, 8], strides = [1, 1]} : vector<8x32xbf16> to vector<8x8xbf16>
    %cst_41 = arith.constant dense<0.000000e+00> : vector<8x8xf32>
    %104 = tpu.matmul %102, %103, %cst_41 {dimension_numbers = #tpu.dot_dimension_numbers<[1], [0], [0], [1], [0, 0, 1, 1], [], []>} : vector<8x8xbf16>, vector<8x8xbf16>, vector<8x8xf32> -> vector<8x8xf32>
    %105 = arith.truncf %104 : vector<8x8xf32> to vector<8x8xbf16>
    %c0_42 = arith.constant 0 : index
    %c16 = arith.constant 16 : index
    %106 = vector.load %arg16[%c0_42, %c16] : memref<8x32xbf16, #tpu.memory_space<vmem>>, vector<8x8xbf16>
    tpu.vector_store %arg16[%c0_42, %c16], %105 {strides = array<i32>} : memref<8x32xbf16, #tpu.memory_space<vmem>>, vector<8x8xbf16>,
    %107 = vector.extract_strided_slice %36 {offsets = [0, 24], sizes = [8, 8], strides = [1, 1]} : vector<8x32xbf16> to vector<8x8xbf16>
    %108 = vector.extract_strided_slice %38 {offsets = [0, 24], sizes = [8, 8], strides = [1, 1]} : vector<8x32xbf16> to vector<8x8xbf16>
    %cst_43 = arith.constant dense<0.000000e+00> : vector<8x8xf32>
    %109 = tpu.matmul %107, %108, %cst_43 {dimension_numbers = #tpu.dot_dimension_numbers<[1], [1], [0], [0], [0, 0, 1, 0], [], []>} : vector<8x8xbf16>, vector<8x8xbf16>, vector<8x8xf32> -> vector<8x8xf32>
    %c0_44 = arith.constant 0 : index
    %c3 = arith.constant 3 : index
    %c0_45 = arith.constant 0 : index
    %c0_46 = arith.constant 0 : index
    %110 = vector.load %arg2[%c0_44, %c3, %c0_45, %c0_46] : memref<1x4x8x8xbf16, #tpu.memory_space<vmem>>, vector<1x1x8x8xbf16>
    %111 = vector.shape_cast %110 : vector<1x1x8x8xbf16> to vector<8x8xbf16>
    %112 = arith.extf %111 : vector<8x8xbf16> to vector<8x8xf32>
    %113 = arith.addf %109, %112 : vector<8x8xf32>
    %cst_47 = arith.constant dense<0xFF800000> : vector<8xf32>
    %114 = vector.multi_reduction <maximumf>, %113, %cst_47 [1] : vector<8x8xf32> to vector<8xf32>
    %115 = vector.shape_cast %114 : vector<8xf32> to vector<8x1xf32>
    %116 = vector.broadcast %115 : vector<8x1xf32> to vector<8x8xf32>
    %117 = arith.subf %113, %116 : vector<8x8xf32>
    %118 = math.exp %117 : vector<8x8xf32>
    %cst_48 = arith.constant dense<0.000000e+00> : vector<8xf32>
    %119 = vector.multi_reduction <add>, %118, %cst_48 [1] : vector<8x8xf32> to vector<8xf32>
    %120 = vector.shape_cast %119 : vector<8xf32> to vector<8x1xf32>
    %121 = tpu.reciprocal %120 {approx = true} : vector<8x1xf32> -> vector<8x1xf32>
    %122 = vector.broadcast %121 : vector<8x1xf32> to vector<8x8xf32>
    %123 = arith.mulf %118, %122 : vector<8x8xf32>
    %124 = arith.truncf %123 : vector<8x8xf32> to vector<8x8xbf16>
    %125 = vector.extract_strided_slice %40 {offsets = [0, 24], sizes = [8, 8], strides = [1, 1]} : vector<8x32xbf16> to vector<8x8xbf16>
    %cst_49 = arith.constant dense<0.000000e+00> : vector<8x8xf32>
    %126 = tpu.matmul %124, %125, %cst_49 {dimension_numbers = #tpu.dot_dimension_numbers<[1], [0], [0], [1], [0, 0, 1, 1], [], []>} : vector<8x8xbf16>, vector<8x8xbf16>, vector<8x8xf32> -> vector<8x8xf32>
    %127 = arith.truncf %126 : vector<8x8xf32> to vector<8x8xbf16>
    %c0_50 = arith.constant 0 : index
    %c24 = arith.constant 24 : index
    %128 = vector.load %arg16[%c0_50, %c24] : memref<8x32xbf16, #tpu.memory_space<vmem>>, vector<8x8xbf16>
    tpu.vector_store %arg16[%c0_50, %c24], %127 {strides = array<i32>} : memref<8x32xbf16, #tpu.memory_space<vmem>>, vector<8x8xbf16>,
    %c0_51 = arith.constant 0 : index
    %c0_52 = arith.constant 0 : index
    %129 = vector.load %arg16[%c0_51, %c0_52] : memref<8x32xbf16, #tpu.memory_space<vmem>>, vector<8x32xbf16>
    %c0_53 = arith.constant 0 : index
    %c0_54 = arith.constant 0 : index
    %130 = vector.load %arg7[%c0_53, %c0_54] : memref<32x32xbf16, #tpu.memory_space<vmem>>, vector<32x32xbf16>
    %cst_55 = arith.constant dense<0.000000e+00> : vector<8x32xf32>
    %131 = tpu.matmul %129, %130, %cst_55 {dimension_numbers = #tpu.dot_dimension_numbers<[1], [0], [0], [1], [0, 0, 1, 1], [], []>} : vector<8x32xbf16>, vector<32x32xbf16>, vector<8x32xf32> -> vector<8x32xf32>
    %c0_56 = arith.constant 0 : index
    %c0_57 = arith.constant 0 : index
    %132 = vector.load %arg8[%c0_56, %c0_57] : memref<1x32xf32, #tpu.memory_space<vmem>>, vector<1x32xf32>
    %133 = vector.broadcast %132 : vector<1x32xf32> to vector<8x32xf32>
    %134 = arith.addf %131, %133 : vector<8x32xf32>
    %135 = arith.addf %1, %134 : vector<8x32xf32>
    %c0_58 = arith.constant 0 : index
    %c0_59 = arith.constant 0 : index
    %136 = vector.load %arg9[%c0_58, %c0_59] : memref<1x32xf32, #tpu.memory_space<vmem>>, vector<1x32xf32>
    %c0_60 = arith.constant 0 : index
    %c0_61 = arith.constant 0 : index
    %137 = vector.load %arg10[%c0_60, %c0_61] : memref<1x32xf32, #tpu.memory_space<vmem>>, vector<1x32xf32>
    %cst_62 = arith.constant dense<0.000000e+00> : vector<8xf32>
    %138 = vector.multi_reduction <add>, %135, %cst_62 [1] : vector<8x32xf32> to vector<8xf32>
    %139 = vector.shape_cast %138 : vector<8xf32> to vector<8x1xf32>
    %cst_63 = arith.constant 3.200000e+01 : f32
    %140 = vector.broadcast %cst_63 : f32 to vector<8x1xf32>
    %141 = arith.divf %139, %140 : vector<8x1xf32>
    %142 = vector.broadcast %141 : vector<8x1xf32> to vector<8x32xf32>
    %143 = arith.subf %135, %142 : vector<8x32xf32>
    %144 = arith.mulf %143, %143 : vector<8x32xf32>
    %cst_64 = arith.constant dense<0.000000e+00> : vector<8xf32>
    %145 = vector.multi_reduction <add>, %144, %cst_64 [1] : vector<8x32xf32> to vector<8xf32>
    %146 = vector.shape_cast %145 : vector<8xf32> to vector<8x1xf32>
    %cst_65 = arith.constant 3.200000e+01 : f32
    %147 = vector.broadcast %cst_65 : f32 to vector<8x1xf32>
    %148 = arith.divf %146, %147 : vector<8x1xf32>
    %cst_66 = arith.constant 9.99999974E-6 : f32
    %149 = vector.broadcast %cst_66 : f32 to vector<8x1xf32>
    %150 = arith.addf %148, %149 : vector<8x1xf32>
    %151 = math.rsqrt %150 : vector<8x1xf32>
    %152 = vector.broadcast %141 : vector<8x1xf32> to vector<8x32xf32>
    %153 = arith.subf %135, %152 : vector<8x32xf32>
    %154 = vector.broadcast %151 : vector<8x1xf32> to vector<8x32xf32>
    %155 = arith.mulf %153, %154 : vector<8x32xf32>
    %156 = vector.broadcast %136 : vector<1x32xf32> to vector<8x32xf32>
    %157 = arith.mulf %155, %156 : vector<8x32xf32>
    %158 = vector.broadcast %137 : vector<1x32xf32> to vector<8x32xf32>
    %159 = arith.addf %157, %158 : vector<8x32xf32>
    %160 = arith.truncf %159 : vector<8x32xf32> to vector<8x32xbf16>
    %c0_67 = arith.constant 0 : index
    %c0_68 = arith.constant 0 : index
    %161 = vector.load %arg11[%c0_67, %c0_68] : memref<32x64xbf16, #tpu.memory_space<vmem>>, vector<32x64xbf16>
    %cst_69 = arith.constant dense<0.000000e+00> : vector<8x64xf32>
    %162 = tpu.matmul %160, %161, %cst_69 {dimension_numbers = #tpu.dot_dimension_numbers<[1], [0], [0], [1], [0, 0, 1, 1], [], []>} : vector<8x32xbf16>, vector<32x64xbf16>, vector<8x64xf32> -> vector<8x64xf32>
    %c0_70 = arith.constant 0 : index
    %c0_71 = arith.constant 0 : index
    %163 = vector.load %arg12[%c0_70, %c0_71] : memref<1x64xf32, #tpu.memory_space<vmem>>, vector<1x64xf32>
    %164 = vector.broadcast %163 : vector<1x64xf32> to vector<8x64xf32>
    %165 = arith.addf %162, %164 : vector<8x64xf32>
    %cst_72 = arith.constant 5.000000e-01 : f32
    %166 = vector.broadcast %cst_72 : f32 to vector<8x64xf32>
    %167 = arith.mulf %166, %165 : vector<8x64xf32>
    %cst_73 = arith.constant 2.000000e+00 : f32
    %168 = math.sqrt %cst_73 : f32
    %169 = vector.broadcast %168 : f32 to vector<8x64xf32>
    %170 = arith.divf %165, %169 : vector<8x64xf32>
    %171 = math.erf %170 : vector<8x64xf32>
    %cst_74 = arith.constant 1.000000e+00 : f32
    %172 = vector.broadcast %cst_74 : f32 to vector<8x64xf32>
    %173 = arith.addf %172, %171 : vector<8x64xf32>
    %174 = arith.mulf %167, %173 : vector<8x64xf32>
    %175 = arith.truncf %174 : vector<8x64xf32> to vector<8x64xbf16>
    %c0_75 = arith.constant 0 : index
    %c0_76 = arith.constant 0 : index
    %176 = vector.load %arg13[%c0_75, %c0_76] : memref<64x32xbf16, #tpu.memory_space<vmem>>, vector<64x32xbf16>
    %cst_77 = arith.constant dense<0.000000e+00> : vector<8x32xf32>
    %177 = tpu.matmul %175, %176, %cst_77 {dimension_numbers = #tpu.dot_dimension_numbers<[1], [0], [0], [1], [0, 0, 1, 1], [], []>} : vector<8x64xbf16>, vector<64x32xbf16>, vector<8x32xf32> -> vector<8x32xf32>
    %c0_78 = arith.constant 0 : index
    %c0_79 = arith.constant 0 : index
    %178 = vector.load %arg14[%c0_78, %c0_79] : memref<1x32xf32, #tpu.memory_space<vmem>>, vector<1x32xf32>
    %179 = vector.broadcast %178 : vector<1x32xf32> to vector<8x32xf32>
    %180 = arith.addf %177, %179 : vector<8x32xf32>
    %181 = arith.addf %135, %180 : vector<8x32xf32>
    %c0_80 = arith.constant 0 : index
    %c0_81 = arith.constant 0 : index
    %c0_82 = arith.constant 0 : index
    %182 = vector.load %arg15[%c0_80, %c0_81, %c0_82] : memref<1x8x32xf32, #tpu.memory_space<vmem>>, vector<1x8x32xf32>
    %183 = vector.shape_cast %182 : vector<1x8x32xf32> to vector<8x32xf32>
    %184 = vector.shape_cast %181 : vector<8x32xf32> to vector<1x8x32xf32>
    tpu.vector_store %arg15[%c0_80, %c0_81, %c0_82], %184 {strides = array<i32>} : memref<1x8x32xf32, #tpu.memory_space<vmem>>, vector<1x8x32xf32>,
    return
  }
  func.func @transform_0(%arg0: i32) -> (i32, i32, i32) {
    %c0_i32 = arith.constant 0 : i32
    %c0_i32_0 = arith.constant 0 : i32
    %c0_i32_1 = arith.constant 0 : i32
    return %arg0, %c0_i32, %c0_i32_0 : i32, i32, i32
  }
  func.func @transform_1(%arg0: i32) -> (i32, i32, i32, i32) {
    %c0_i32 = arith.constant 0 : i32
    %c0_i32_0 = arith.constant 0 : i32
    %c0_i32_1 = arith.constant 0 : i32
    %c0_i32_2 = arith.constant 0 : i32
    return %arg0, %c0_i32, %c0_i32_0, %c0_i32_1 : i32, i32, i32, i32
  }
  func.func @transform_2(%arg0: i32) -> (i32, i32) {
    %c0_i32 = arith.constant 0 : i32
    %c0_i32_0 = arith.constant 0 : i32
    %c0_i32_1 = arith.constant 0 : i32
    return %c0_i32, %c0_i32_0 : i32, i32
  }
  func.func @transform_3(%arg0: i32) -> (i32, i32) {
    %c0_i32 = arith.constant 0 : i32
    %c0_i32_0 = arith.constant 0 : i32
    %c0_i32_1 = arith.constant 0 : i32
    return %c0_i32, %c0_i32_0 : i32, i32
  }
  func.func @transform_4(%arg0: i32) -> (i32, i32) {
    %c0_i32 = arith.constant 0 : i32
    %c0_i32_0 = arith.constant 0 : i32
    %c0_i32_1 = arith.constant 0 : i32
    return %c0_i32, %c0_i32_0 : i32, i32
  }
  func.func @transform_5(%arg0: i32) -> (i32, i32) {
    %c0_i32 = arith.constant 0 : i32
    %c0_i32_0 = arith.constant 0 : i32
    %c0_i32_1 = arith.constant 0 : i32
    return %c0_i32, %c0_i32_0 : i32, i32
  }
  func.func @transform_6(%arg0: i32) -> (i32, i32) {
    %c0_i32 = arith.constant 0 : i32
    %c0_i32_0 = arith.constant 0 : i32
    %c0_i32_1 = arith.constant 0 : i32
    return %c0_i32, %c0_i32_0 : i32, i32
  }
  func.func @transform_7(%arg0: i32) -> (i32, i32) {
    %c0_i32 = arith.constant 0 : i32
    %c0_i32_0 = arith.constant 0 : i32
    %c0_i32_1 = arith.constant 0 : i32
    return %c0_i32, %c0_i32_0 : i32, i32
  }
  func.func @transform_8(%arg0: i32) -> (i32, i32) {
    %c0_i32 = arith.constant 0 : i32
    %c0_i32_0 = arith.constant 0 : i32
    %c0_i32_1 = arith.constant 0 : i32
    return %c0_i32, %c0_i32_0 : i32, i32
  }
  func.func @transform_9(%arg0: i32) -> (i32, i32) {
    %c0_i32 = arith.constant 0 : i32
    %c0_i32_0 = arith.constant 0 : i32
    %c0_i32_1 = arith.constant 0 : i32
    return %c0_i32, %c0_i32_0 : i32, i32
  }
  func.func @transform_10(%arg0: i32) -> (i32, i32) {
    %c0_i32 = arith.constant 0 : i32
    %c0_i32_0 = arith.constant 0 : i32
    %c0_i32_1 = arith.constant 0 : i32
    return %c0_i32, %c0_i32_0 : i32, i32
  }
  func.func @transform_11(%arg0: i32) -> (i32, i32) {
    %c0_i32 = arith.constant 0 : i32
    %c0_i32_0 = arith.constant 0 : i32
    %c0_i32_1 = arith.constant 0 : i32
    return %c0_i32, %c0_i32_0 : i32, i32
  }
  func.func @transform_12(%arg0: i32) -> (i32, i32) {
    %c0_i32 = arith.constant 0 : i32
    %c0_i32_0 = arith.constant 0 : i32
    %c0_i32_1 = arith.constant 0 : i32
    return %c0_i32, %c0_i32_0 : i32, i32
  }
  func.func @transform_13(%arg0: i32) -> (i32, i32) {
    %c0_i32 = arith.constant 0 : i32
    %c0_i32_0 = arith.constant 0 : i32
    %c0_i32_1 = arith.constant 0 : i32
    return %c0_i32, %c0_i32_0 : i32, i32
  }
  func.func @transform_14(%arg0: i32) -> (i32, i32, i32) {
    %c0_i32 = arith.constant 0 : i32
    %c0_i32_0 = arith.constant 0 : i32
    %c0_i32_1 = arith.constant 0 : i32
    return %arg0, %c0_i32, %c0_i32_0 : i32, i32, i32
  }
}

</mosaic_0001>

<bundles_post_ra>
// kernel: tpu_custom_call.1
= control target key start
LH: loop header
LB: loop body
LE: loop exit
PB: predicated region body
PF: predicated region fallthrough
CT: control target
= control target key end

     0   :  { %s2446_s0 = inlined_call_operand.vmem [shape: f32[2,8,32], index: 0, kind: input, shape index: {}]   ;;  %s2447_s1 = inlined_call_operand.vmem [shape: bf16[2,4,8,8], index: 1, kind: input, shape index: {}]   ;;  %s2448_s2 = inlined_call_operand.vmem [shape: f32[1,32], index: 2, kind: input, shape index: {}]   ;;  %s2449_s3 = inlined_call_operand.vmem [shape: f32[1,32], index: 3, kind: input, shape index: {}]   ;;  %s2450_s4 = inlined_call_operand.hbm [shape: bf16[32,96], index: 4, kind: input, shape index: {}]   ;;  %s2451_s5 = inlined_call_operand.vmem [shape: f32[1,96], index: 5, kind: input, shape index: {}]   ;;  %s2452_s6 = inlined_call_operand.hbm [shape: bf16[32,32], index: 6, kind: input, shape index: {}]   ;;  %s2453_s7 = inlined_call_operand.vmem [shape: f32[1,32], index: 7, kind: input, shape index: {}]   ;;  %s2454_s8 = inlined_call_operand.vmem [shape: f32[1,32], index: 8, kind: input, shape index: {}]   ;;  %s2455_s9 = inlined_call_operand.hbm [shape: f32[1,32], index: 9, kind: input, shape index: {}]   ;;  %s2456_s10 = inlined_call_operand.hbm [shape: bf16[32,64], index: 10, kind: input, shape index: {}]   ;;  %s2457_s11 = inlined_call_operand.hbm [shape: f32[1,64], index: 11, kind: input, shape index: {}]   ;;  %s2458_s12 = inlined_call_operand.vmem [shape: bf16[64,32], index: 12, kind: input, shape index: {}]   ;;  %s2459_s13 = inlined_call_operand.vmem [shape: f32[1,32], index: 13, kind: input, shape index: {}]   ;;  %s2460_s14 = inlined_call_operand.hbm [shape: f32[2,8,32], index: 14, kind: output, shape index: {}]  }
   0x1   :  { %2470 = sst [smem:[#allocation23_spill]] %s2452_s6 }
   0x2   :  { %19 = vsyncpa [#allocation4], 0 }
   0x3   :  { %20 = vsyncpa [#allocation7], 0 }
   0x4   :  { %21 = vsyncpa [#allocation10], 0 }
   0x5   :  { %22 = vsyncpa [#allocation5], 0 }
   0x6   :  { %24 = vsyncpa [#allocation5 + $0x1], 0  ;;  %s2148_s29 = smov 0   ;;  %s2150_s30 = smov 0  }
   0x7   :  { %s2152_s15 = smov 0   ;;  %s2154_s16 = smov 0  }
   0x8 LB: > { %2471 = sst [smem:[#allocation17_spill]] %s2035_s29  ;;  %s2169_s17 = sadd.s32 4294967295, %s2047_s16   ;;  %s2047_s16 = sphi %s2154_s16, %s2495_s16   ;;  %s2043_s15 = sphi %s2152_s15, %s2497_s15   ;;  %s2039_s30 = sphi %s2150_s30, %s2499_s30   ;;  %s2035_s29 = sphi %s2148_s29, %s2498_s29  }
   0x9   : > { %2472 = sst [smem:[#allocation18_spill]] %s2043_s15  ;;  %s1529_s18 = sadd.s32 4294967294, %s2047_s16  }
   0xa   : > { %2473 = sst [smem:[#allocation19_spill]] %s2047_s16  ;;  %s2173_s19 = sadd.s32 1, %s2047_s16  }
   0xb   : > { %2474 = sst [smem:[#allocation20_spill]] %s2173_s19  ;;  %s341_s20 = sadd.s32 1, %s2043_s15 }
   0xc   : > { %s338_s21 = ssub.s32 %s2047_s16, %s2173_s19  ;;  %p351_p0 = scmp.ne.s32.totalorder %s2043_s15, %s2039_s30 }
   0xd   : > { %p339_p1 = scmp.eq.s32.totalorder %s338_s21, 0  ;;  %p352_p2 = scmp.eq.s32.totalorder %s2169_s17, 1 }
   0xe   : > { %p357_p3 = scmp.ne.s32.totalorder %s2039_s30, %s2035_s29  ;;  %p358_p4 = scmp.eq.s32.totalorder %s1529_s18, 1 }
   0xf   : > { %s2184_s22 = scalar_select %p339_p1, %s2043_s15, %s341_s20  }
  0x10   : > { %p2186_p5 = por %p352_p2, %p351_p0  ;;  %p2190_p6 = por %p358_p4, %p357_p3 }
  0x11   : > { %2475 = sst [smem:[#allocation21_spill]] %s2184_s22  ;;  %p1530_p7 = scmp.ge.s32.totalorder %s2047_s16, 1 }
  0x12   : > { %s2476_s23 = scalar_select %p2186_p5, 1, 0 }
  0x13   : > { %s2477_s24 = scalar_select %p2190_p6, 1, 0 }
  0x14   : > { %p365_p8 = scmp.lt.s32.totalorder %s2047_s16, 3  ;;  %p2466_p9 = scmp.eq.s32.totalorder %s2169_s17, 0 }
  0x15   : > { %2478 = sst [smem:[#allocation22_spill]] %s2477_s24  ;;  %s2049_s26 = smov [#allocation6]  }
  0x16   : > { %p2197_p10 = pnand %p1530_p7, %p365_p8  ;;  %s399_s27 = sshll.u32 %s2049_s26, 4  ;;  %s400_s27 = int_to_ptr.vmem [resolvable:$true] %s399_s27 }
  0x17   : > { %s2050_s18 = smov [#allocation9]   ;;  %s2051_s21 = smov [#allocation3]  }
  0x18   : > { %s2479_s25 = scalar_select %p2197_p10, 1, 0 }
  0x19   : > { %p1727_p11 = pneg %p2197_p10  ;;  %s429_s20 = sshll.u32 %s2050_s18, 4  ;;  %s430_s20 = int_to_ptr.vmem [resolvable:$true] %s429_s20 }
  0x1a   : > { %s383_s22 = sshll.u32 %s2051_s21, 4  ;;  %s1856_s19 = scalar_lea.vmem %s400_s27, 256  ;;  %s384_s22 = int_to_ptr.vmem [resolvable:$true] %s383_s22 }
  0x1b   : > { %p2205_p12 = pnand %p2466_p9, %p1727_p11  ;;  %p1857_p0 = scmp.ne.s32.totalorder %s400_s27, %s1856_s19 }
  0x1c   : > { %p1864_p3 = scmp.lt.s32.totalorder %s400_s27, %s400_s27  ;;  %p1865_p4 = scmp.lt.s32.totalorder %s1856_s19, %s1856_s19 }
  0x1d   : > { %p2211_p13 = pneg %p2205_p12 }
  0x1e   : > { %p1866_p7 = por %p1865_p4, %p1864_p3 }
  0x1f   : > { %p1859_p1 = pnand %p1857_p0, %p2211_p13 }
  0x21   : > { %p1860_p2 = pneg %p1859_p1 }
  0x23   : > { %p1867_p8 = pnand %p1866_p7, %p1860_p2 }
  0x25   : > { %1870 = shalt.err (!%p1867_p8)
}
  0x26   : > { %s2052_s26 = smov 64   ;;  %s2053_s18 = smov 4  }
  0x27   : > { %s2482_s6 = sld [smem:[#allocation23_spill]]  ;;  %s1882_s29 = scalar_lea.vmem %s430_s20, 256 }
  0x28   : > { %p1883_p11 = scmp.ne.s32.totalorder %s430_s20, %s1882_s29  ;;  %p1890_p1 = scmp.lt.s32.totalorder %s430_s20, %s430_s20 }
  0x29   : > { %p1891_p6 = scmp.lt.s32.totalorder %s1882_s29, %s1882_s29 }
  0x2a   : > { %p1885_p9 = pnand %p1883_p11, %p2211_p13 }
  0x2b   : > { %p1892_p5 = por %p1891_p6, %p1890_p1 }
  0x2c   : > { %p1886_p0 = pneg %p1885_p9 }
  0x2d   : > { %1733 = dma.hbm_to_vmem [thread:$0]  (!%p2205_p12), %s2482_s6, 256, %s400_s27, [#allocation7], %s2052_s26, %s2052_s26, %s2053_s18  }
  0x2e   : > { %p1893_p3 = pnand %p1892_p5, %p1886_p0 }
  0x30   : > { %1896 = shalt.err (!%p1893_p3)
}
  0x31   : > { %1739 = dma.hbm_to_vmem [thread:$0]  (!%p2205_p12), %s2456_s10, 256, %s430_s20, [#allocation10], %s2052_s26, %s2052_s26, %s2053_s18  }
  0x32   : > { %s1908_s24 = scalar_lea.vmem %s384_s22, 256  ;;  %p1916_p8 = scmp.lt.s32.totalorder %s384_s22, %s384_s22 }
  0x33   : > { %p1909_p2 = scmp.ne.s32.totalorder %s384_s22, %s1908_s24  ;;  %p1917_p9 = scmp.lt.s32.totalorder %s1908_s24, %s1908_s24 }
  0x35   : > { %p1911_p4 = pnand %p1909_p2, %p2211_p13  ;;  %p1918_p11 = por %p1917_p9, %p1916_p8 }
  0x37   : > { %p1912_p7 = pneg %p1911_p4 }
  0x39   : > { %p1919_p10 = pnand %p1918_p11, %p1912_p7 }
  0x3b   : > { %1922 = shalt.err (!%p1919_p10)
}
  0x3c   : > { %1730 = dma.hbm_to_vmem [thread:$0]  (!%p2205_p12), %s2450_s4, 256, %s384_s22, [#allocation4], %s2052_s26, %s2052_s26, %s2053_s18  }
  0x3d   : > { %s2054_s16 = smov [#allocation8]   ;;  %s2055_s21 = smov [#allocation11]  }
  0x3e   : > { %s419_s20 = sshll.u32 %s2054_s16, 4  ;;  %s443_s19 = sshll.u32 %s2055_s21, 4  ;;  %s420_s20 = int_to_ptr.vmem [resolvable:$true] %s419_s20  ;;  %s444_s19 = int_to_ptr.vmem [resolvable:$true] %s443_s19 }
  0x3f   : > { %s1934_s6 = scalar_lea.vmem %s420_s20, 16  ;;  %s1941_s24 = scalar_lea.vmem %s420_s20, 32 }
  0x40   : > { %p1935_p5 = scmp.ne.s32.totalorder %s420_s20, %s1934_s6  ;;  %p1942_p1 = scmp.lt.s32.totalorder %s420_s20, %s420_s20 }
  0x41   : > { %p1943_p10 = scmp.lt.s32.totalorder %s1941_s24, %s1934_s6 }
  0x42   : > { %p1937_p6 = pnand %p1935_p5, %p2211_p13 }
  0x43   : > { %p1944_p3 = por %p1943_p10, %p1942_p1 }
  0x44   : > { %p1938_p0 = pneg %p1937_p6 }
  0x46   : > { %p1945_p2 = pnand %p1944_p3, %p1938_p0 }
  0x48   : > { %1948 = shalt.err (!%p1945_p2)
}
  0x49   : > { %1736 = dma.hbm_to_vmem [thread:$0]  (!%p2205_p12), %s2455_s9, 16, %s420_s20, [#allocation7]  }
  0x4a   : > { %s1960_s26 = scalar_lea.vmem %s444_s19, 16  ;;  %s1967_s18 = scalar_lea.vmem %s444_s19, 32 }
  0x4b   : > { %p1961_p4 = scmp.ne.s32.totalorder %s444_s19, %s1960_s26  ;;  %p1968_p9 = scmp.lt.s32.totalorder %s444_s19, %s444_s19 }
  0x4c   : > { %p1969_p11 = scmp.lt.s32.totalorder %s1967_s18, %s1960_s26 }
  0x4d   : > { %p1963_p7 = pnand %p1961_p4, %p2211_p13 }
  0x4e   : > { %p1970_p5 = por %p1969_p11, %p1968_p9 }
  0x4f   : > { %p1964_p8 = pneg %p1963_p7 }
  0x51   : > { %p1971_p6 = pnand %p1970_p5, %p1964_p8 }
  0x53   : > { %1974 = shalt.err (!%p1971_p6)
}
  0x54   : > { %1742 = dma.hbm_to_vmem [thread:$0]  (!%p2205_p12), %s2457_s11, 16, %s444_s19, [#allocation10]  }
  0x55   : > { %p2483_p0 = scmp.ne.s32.totalorder %s2479_s25, 0 }
  0x56   : > { %p2484_p1 = scmp.eq.s32.totalorder (!%p2483_p0), %s2169_s17, 0 }
  0x57   : > { %477 = sbr.rel (%p2483_p0) target bundleno = 2559 (0x9ff), region = 76 }
  0x5c   : > { %2018 = dma.done.wait (%p2484_p1), [#allocation4], 256   ;;  %p2485_p13 = pmov %p2484_p1 }
  0x5d   : > { %p2486_p10 = pmov %p2484_p1 }
  0x5e   : > { %2020 = vsyncadd (%p2485_p13), [#allocation4], 4294967040 }
  0x5f   : > { %2022 = dma.done.wait (%p2486_p10), [#allocation7], 272   ;;  %p2487_p3 = pmov %p2484_p1 }
  0x60   : > { %p2488_p2 = pmov %p2484_p1 }
  0x61   : > { %2024 = vsyncadd (%p2487_p3), [#allocation7], 4294967024 }
  0x62   : > { %2026 = dma.done.wait (%p2488_p2), [#allocation10], 272   ;;  %p2489_p12 = pmov %p2484_p1 }
  0x63   : > { %p543_p4 = scmp.lt.s32.totalorder %s2169_s17, 1  ;;  %vm556_vm0 = vcmask 261120   ;;  %v1813_v7 = vld [vmem:[#allocation3 + $0x8] sm:$0xff]   ;;  %v2056_v8 = vmov 0.0   ;;  %vm2057_vm1 = vmmov 0   ;;  %v1814_v9 = vld [vmem:[#allocation3] sm:$0xff]  }
  0x64   : > { %2028 = vsyncadd (%p2489_p12), [#allocation10], 4294967024  ;;  %1621 = vmatprep.subr.bf16.mxu0 %v2056_v8  ;;  %1625 = vmatprep.mubr.msk.bf16.mxu0 %vm2057_vm1, %v2056_v8  ;;  %v1547_v14 = vld [vmem:[%s2448_s2] ss:$0 sm:$0xff]  ;;  %s2058_s18 = smov 96   ;;  %s2059_s6 = smov 120  }
  0x65   : > { %s2266_s15 = scalar_select %p543_p4, %s2169_s17, 1  ;;  %1622 = vmatpush3.bf16.msra.mxu0 %v1813_v7  ;;  %1629 = vmatprep.subr.bf16.mxu1 %v2056_v8  ;;  %v1548_v16 = vld [vmem:[%s2449_s3] ss:$0 sm:$0xff]  ;;  %vm660_vm2 = vcmask 64512   ;;  %vm724_vm3 = vcmask 1043456   ;;  %vm769_vm4 = vcmask 60416  }
  0x66   : > { %1623 = vmatprep.subr.bf16.mxu0 %v2056_v8  ;;  %1631 = vmatprep.mubr.msk.bf16.mxu1 %vm2057_vm1, %v2056_v8  ;;  %v1549_v20 = vld [vmem:[%s2451_s5] ss:$0 sm:$0xff]  ;;  %s2060_s27 = smov 88   ;;  %s2062_s28 = smov 112   ;;  %vm892_vm5 = vcmask 126016   ;;  %vm1014_vm6 = vcmask 191616  }
  0x67   : > { %s1544_s25 = sshll.u32 %s2266_s15, 3  ;;  %s2063_s16 = smov 72   ;;  %vm1136_vm7 = vcmask 257216   ;;  %vm1348_vm8 = vcmask 523264  }
  0x68   : > { %s546_s20 = scalar_lea.vmem %s2446_s0, %s1544_s25  ;;  %s2061_s25 = smov 80  }
  0x69   : > { %v2272_v0 = vld [vmem:[%s546_s20] sm:$0xff]  ;;  %1624 = vmatpush3.bf16.msra.mxu0 %v1814_v9  ;;  %s2064_s20 = smov 104   ;;  %s1587_s21 = sshll.u32 %s2266_s15, 4 }
  0x6a   : > { %v557_v1 = vsel %vm556_vm0, %v2272_v0, 0.0  ;;  %1635 = vmatprep.subr.bf16.mxu0 %v2056_v8  ;;  %s551_s29 = scalar_lea.vmem %s2447_s1, %s1587_s21  ;;  %s2065_s15 = smov 64  }
  0x6b   : > { %558 = vadd.xlane.f32.xlu0 %v557_v1  ;;  %v655_v40 = vld [vmem:[%s551_s29] sm:$0xff]   ;;  %v1559_v52 = vld [vmem:[%s551_s29 + $0x8] sm:$0xff]   ;;  %s2066_s22 = smov 56   ;;  %s2067_s26 = smov 48  }
  0x6c   : > { %v656_v41 = vunpack.c.l.bf16 %v655_v40  ;;  %v773_v47 = vunpack.c.h.bf16 %v655_v40  ;;  %v896_v55 = vunpack.c.l.bf16 %v1559_v52  ;;  %v1018_v62 = vunpack.c.h.bf16 %v1559_v52  ;;  %p2490_p8 = scmp.ne.s32.totalorder %s2476_s23, 0 }
  0xf4   : > { %v559_v2 = vpop.xlane.xlu0 %558 }
  0xf5   : > { %v561_v3 = vmul.f32 0.03125, %v559_v2 }
  0xf7   : > { %v562_v4 = vsub.f32 %v2272_v0, %v561_v3 }
  0xf9   : > { %v563_v5 = vmul.f32 %v562_v4, %v562_v4 }
  0xfb   : > { %v564_v6 = vsel %vm556_vm0, %v563_v5, 0.0 }
  0xfc   : > { %565 = vadd.xlane.f32.xlu0 %v564_v6 }
 0x185   : > { %v566_v10 = vpop.xlane.xlu0 %565 }
 0x186   : > { %v567_v11 = vmul.f32 0.03125, %v566_v10 }
 0x188   : > { %v568_v12 = vadd.f32 1e-05, %v567_v11 }
 0x18a   : > { %1823 = vrsqrt.f32 %v568_v12 }
 0x197   : > { %v1824_v13 = vpop.eup %1823 }
 0x198   : > { %v570_v15 = vmul.f32 %v1824_v13, %v562_v4 }
 0x19a   : > { %v577_v17 = vmul.f32 %v1547_v14, %v570_v15 }
 0x19c   : > { %v584_v18 = vadd.f32 %v1548_v16, %v577_v17 }
 0x19e   : > { %v585_v19 = vpack.c.bf16 %v584_v18, %v584_v18 }
 0x1a0   : > { %1626 = vmatmul.mubr.msk.bf16.vlgmr.msra.gmra.mxu0 %vm556_vm0, %v585_v19 }
 0x1a1   : > { %1637 = vmatprep.mubr.msk.bf16.mxu0 %vm2057_vm1, %v2056_v8 }
 0x260   : > { %v646_v21 = vpop.f32.mrf.mxu0 }
 0x261   : > { %v647_v22 = vadd.f32 %v1549_v20, %v646_v21 }
 0x262   : > { %v1627_v23 = vpop.f32.mrf.mxu0 }
 0x263   : > { %v652_v24 = vmul.f32 0.35355338, %v647_v22  ;;  %v2298_v25 = vpack.c.bf16 %v647_v22, %v647_v22 }
 0x264   : > { %v649_v26 = vpop.f32.mrf.mxu0 }
 0x265   : > { %v653_v27 = vpack.c.bf16 %v652_v24, %v652_v24  ;;  %658 = vrot.lane.b32.xlu1 %v2298_v25, %s2058_s18  ;;  %s2068_s18 = smov 40  }
 0x266   : > { %v1628_v28 = vpop.f32.mrf.mxu0 }
 0x267   : > { %775 = vrot.lane.b32.xlu0 %v653_v27, %s2059_s6  ;;  %s2069_s6 = smov 8  }
 0x269   : > { %777 = vrot.lane.b32.xlu1 %v2298_v25, %s2060_s27  ;;  %s2070_s27 = smov 16  }
 0x26d   : > { %899 = vrot.lane.b32.xlu1 %v2298_v25, %s2061_s25  ;;  %s2071_s25 = smov 24  }
 0x271   : > { %897 = vrot.lane.b32.xlu1 %v653_v27, %s2062_s28 }
 0x275   : > { %1021 = vrot.lane.b32.xlu1 %v2298_v25, %s2063_s16 }
 0x279   : > { %1019 = vrot.lane.b32.xlu1 %v653_v27, %s2064_s20  ;;  %s1584_s20 = sshll.u32 %s2169_s17, 7 }
 0x2d7   : > { %v659_v29 = vpop.permute.xlu1 %658 }
 0x2d8   : > { %v665_v30 = vsel %vm660_vm2, %v659_v29, 0 }
 0x2d9   : > { %1630 = vmatpush3.bf16.xpose.msra.mxu1 %v665_v30  ;;  %v776_v34 = vpop.permute.xlu0 %775 }
 0x2da   : > { %1641 = vmatprep.subr.bf16.mxu1 %v2056_v8 }
 0x2db   : > { %v778_v31 = vpop.permute.xlu1 %777 }
 0x2dc   : > { %v783_v32 = vsel %vm660_vm2, %v778_v31, 0 }
 0x2df   : > { %v900_v33 = vpop.permute.xlu1 %899 }
 0x2e0   : > { %1632 = vmatmul.mubr.msk.bf16.vlgmr.msra.gmra.mxu1 %vm660_vm2, %v653_v27  ;;  %v905_v36 = vsel %vm660_vm2, %v900_v33, 0 }
 0x2e1   : > { %1642 = vmatpush3.bf16.xpose.msra.mxu1 %v783_v32  ;;  %1643 = vmatprep.mubr.msk.bf16.mxu1 %vm2057_vm1, %v2056_v8 }
 0x2e2   : > { %1653 = vmatprep.subr.bf16.mxu1 %v2056_v8 }
 0x2e3   : > { %v898_v35 = vpop.permute.xlu1 %897 }
 0x2e7   : > { %v1022_v37 = vpop.permute.xlu1 %1021 }
 0x2e8   : > { %1644 = vmatmul.mubr.msk.bf16.vlgmr.msra.gmra.mxu1 %vm660_vm2, %v776_v34  ;;  %v1027_v38 = vsel %vm660_vm2, %v1022_v37, 0 }
 0x2e9   : > { %1654 = vmatpush3.bf16.xpose.msra.mxu1 %v905_v36  ;;  %1655 = vmatprep.mubr.msk.bf16.mxu1 %vm2057_vm1, %v2056_v8 }
 0x2ea   : > { %1665 = vmatprep.subr.bf16.mxu1 %v2056_v8 }
 0x2eb   : > { %v1020_v39 = vpop.permute.xlu1 %1019 }
 0x2f0   : > { %1656 = vmatmul.mubr.msk.bf16.vlgmr.msra.gmra.mxu1 %vm660_vm2, %v898_v35 }
 0x2f1   : > { %1666 = vmatpush3.bf16.xpose.msra.mxu1 %v1027_v38  ;;  %1667 = vmatprep.mubr.msk.bf16.mxu1 %vm2057_vm1, %v2056_v8 }
 0x2f2   : > { %1677 = vmatprep.subr.bf16.mxu1 %v2056_v8 }
 0x2f8   : > { %1668 = vmatmul.mubr.msk.bf16.vlgmr.msra.gmra.mxu1 %vm660_vm2, %v1020_v39 }
 0x2f9   : > { %1681 = vmatprep.mubr.msk.bf16.mxu1 %vm2057_vm1, %v2056_v8 }
 0x3a0   : > { %v701_v42 = vpop.f32.mrf.mxu1 }
 0x3a1   : > { %v702_v43 = vadd.f32 %v701_v42, %v656_v41 }
 0x3a2   : > { %v1633_v44 = vpop.f32.mrf.mxu1 }
 0x3a3   : > { %v707_v45 = vsel %vm660_vm2, %v702_v43, -inf }
 0x3a4   : > { %708 = vmax.xlane.f32.xlu1 %v707_v45  ;;  %v704_v46 = vpop.f32.mrf.mxu1 }
 0x3a6   : > { %v1634_v48 = vpop.f32.mrf.mxu1 }
 0x3a8   : > { %v819_v49 = vpop.f32.mrf.mxu1 }
 0x3a9   : > { %v820_v50 = vadd.f32 %v819_v49, %v773_v47 }
 0x3aa   : > { %v1645_v51 = vpop.f32.mrf.mxu1 }
 0x3ab   : > { %v825_v53 = vsel %vm660_vm2, %v820_v50, -inf }
 0x3ac   : > { %826 = vmax.xlane.f32.xlu0 %v825_v53  ;;  %v822_v54 = vpop.f32.mrf.mxu1 }
 0x3ae   : > { %v1646_v56 = vpop.f32.mrf.mxu1 }
 0x3b0   : > { %v941_v57 = vpop.f32.mrf.mxu1 }
 0x3b1   : > { %v942_v58 = vadd.f32 %v941_v57, %v896_v55 }
 0x3b2   : > { %v1657_v59 = vpop.f32.mrf.mxu1 }
 0x3b3   : > { %v947_v60 = vsel %vm660_vm2, %v942_v58, -inf }
 0x3b4   : > { %948 = vmax.xlane.f32.xlu1 %v947_v60  ;;  %v944_v61 = vpop.f32.mrf.mxu1 }
 0x3b6   : > { %v1658_v63 = vpop.f32.mrf.mxu1 }
 0x3b8   : > { %v1063_v1 = vpop.f32.mrf.mxu1 }
 0x3b9   : > { %v1064_v2 = vadd.f32 %v1063_v1, %v1018_v62  ;;  %v1815_v62 = vld [vmem:[#allocation6 + $0x8] sm:$0xff]   ;;  %v1816_v1 = vld [vmem:[#allocation6] sm:$0xff]  }
 0x3ba   : > { %v1669_v3 = vpop.f32.mrf.mxu1  ;;  %1678 = vmatpush3.bf16.msra.mxu1 %v1815_v62 }
 0x3bb   : > { %v1069_v4 = vsel %vm660_vm2, %v1064_v2, -inf  ;;  %1679 = vmatprep.subr.bf16.mxu1 %v2056_v8 }
 0x3bc   : > { %1070 = vmax.xlane.f32.xlu0 %v1069_v4  ;;  %v1066_v5 = vpop.f32.mrf.mxu1 }
 0x3be   : > { %v1670_v6 = vpop.f32.mrf.mxu1  ;;  %1680 = vmatpush3.bf16.msra.mxu1 %v1816_v1 }
 0x3bf   : > { %1693 = vmatprep.subr.bf16.mxu1 %v2056_v8 }
 0x42d   : > { %v709_v7 = vpop.xlane.xlu1 %708 }
 0x42e   : > { %v710_v9 = vsub.f32 %v702_v43, %v709_v7 }
 0x430   : > { %v711_v10 = vmul.f32 1.442695, %v710_v9 }
 0x432   : > { %1825 = vpow2.f32 %v711_v10 }
 0x435   : > { %v827_v11 = vpop.xlane.xlu0 %826 }
 0x436   : > { %v828_v12 = vsub.f32 %v820_v50, %v827_v11 }
 0x438   : > { %v829_v13 = vmul.f32 1.442695, %v828_v12 }
 0x43a   : > { %1827 = vpow2.f32 %v829_v13 }
 0x43d   : > { %v949_v23 = vpop.xlane.xlu1 %948 }
 0x43e   : > { %v950_v24 = vsub.f32 %v942_v58, %v949_v23 }
 0x43f   : > { %v1826_v14 = vpop.eup %1825 }
 0x440   : > { %v713_v15 = vsel %vm660_vm2, %v1826_v14, 0.0  ;;  %v951_v26 = vmul.f32 1.442695, %v950_v24 }
 0x441   : > { %714 = vadd.xlane.f32.xlu1 %v713_v15 }
 0x445   : > { %v1071_v16 = vpop.xlane.xlu0 %1070 }
 0x446   : > { %v1072_v17 = vsub.f32 %v1064_v2, %v1071_v16  ;;  %v1567_v16 = vld [vmem:[%s2453_s7] ss:$0 sm:$0xff] }
 0x447   : > { %v1828_v18 = vpop.eup %1827 }
 0x448   : > { %v1073_v19 = vmul.f32 1.442695, %v1072_v17  ;;  %v831_v20 = vsel %vm660_vm2, %v1828_v18, 0.0 }
 0x449   : > { %832 = vadd.xlane.f32.xlu0 %v831_v20 }
 0x44a   : > { %1829 = vpow2.f32 %v1073_v19 }
 0x44b   : > { %1831 = vpow2.f32 %v951_v26 }
 0x452   : > { %719 = vrot.lane.b32.xlu1 %v2298_v25, %s2065_s15  ;;  %s2404_s15 = scalar_lea.hbm %s2460_s14, %s1584_s20 }
 0x457   : > { %v1830_v21 = vpop.eup %1829 }
 0x458   : > { %v1075_v22 = vsel %vm660_vm2, %v1830_v21, 0.0  ;;  %v1832_v27 = vpop.eup %1831 }
 0x459   : > { %1076 = vadd.xlane.f32.xlu0 %v1075_v22  ;;  %v953_v28 = vsel %vm660_vm2, %v1832_v27, 0.0 }
 0x46f   : > { %837 = vrot.lane.b32.xlu0 %v2298_v25, %s2066_s22 }
 0x476   : > { %954 = vadd.xlane.f32.xlu1 %v953_v28 }
 0x487   : > { %959 = vrot.lane.b32.xlu1 %v2298_v25, %s2067_s26  ;;  %s2072_s26 = smov [#allocation12]  }
 0x48b   : > { %1081 = vrot.lane.b32.xlu1 %v2298_v25, %s2068_s18  ;;  %s1979_s18 = sshll.u32 %s2072_s26, 4  ;;  %s1980_s18 = int_to_ptr.vmem [resolvable:$false] %s1979_s18 }
 0x4ca   : > { %v715_v29 = vpop.xlane.xlu1 %714 }
 0x4cb   : > { %1833 = vrcp.f32 %v715_v29 }
 0x4ce   : > { %v720_v30 = vpop.permute.xlu1 %719 }
 0x4cf   : > { %v726_v31 = vsel %vm724_vm3, %v720_v30, 0  ;;  %v1817_v30 = vld [vmem:[#allocation9 + $0x8] sm:$0xff]  }
 0x4d0   : > { %1636 = vmatpush3.bf16.msra.mxu0 %v726_v31  ;;  %v1818_v31 = vld [vmem:[#allocation9] sm:$0xff]  }
 0x4d1   : > { %1647 = vmatprep.subr.bf16.mxu0 %v2056_v8 }
 0x4d2   : > { %v833_v32 = vpop.xlane.xlu0 %832 }
 0x4d3   : > { %1835 = vrcp.f32 %v833_v32 }
 0x4d8   : > { %v1834_v33 = vpop.eup %1833 }
 0x4d9   : > { %v717_v34 = vmul.f32 %v1834_v33, %v1826_v14 }
 0x4db   : > { %v718_v35 = vpack.c.bf16 %v717_v34, %v717_v34 }
 0x4dd   : > { %1638 = vmatmul.mubr.msk.bf16.vlgmr.msra.gmra.mxu0 %vm660_vm2, %v718_v35  ;;  %v1571_v35 = vld [vmem:[%s2454_s8] ss:$0 sm:$0xff] }
 0x4de   : > { %1649 = vmatprep.mubr.msk.bf16.mxu0 %vm2057_vm1, %v2056_v8 }
 0x4e0   : > { %v1836_v25 = vpop.eup %1835 }
 0x4e1   : > { %v835_v37 = vmul.f32 %v1836_v25, %v1828_v18 }
 0x4e2   : > { %v1077_v36 = vpop.xlane.xlu0 %1076 }
 0x4e3   : > { %v836_v40 = vpack.c.bf16 %v835_v37, %v835_v37 }
 0x4e6   : > { %v838_v38 = vpop.permute.xlu0 %837 }
 0x4e7   : > { %v843_v39 = vsel %vm724_vm3, %v838_v38, 0 }
 0x4e8   : > { %1648 = vmatpush3.bf16.msra.mxu0 %v843_v39 }
 0x4e9   : > { %1659 = vmatprep.subr.bf16.mxu0 %v2056_v8 }
 0x4eb   : > { %1650 = vmatmul.mubr.msk.bf16.vlgmr.msra.gmra.mxu0 %vm660_vm2, %v836_v40  ;;  %v1819_v40 = vld [vmem:[%s2458_s12 + $0x18] sm:$0xff]  }
 0x4ec   : > { %1661 = vmatprep.mubr.msk.bf16.mxu0 %vm2057_vm1, %v2056_v8 }
 0x4ff   : > { %v955_v41 = vpop.xlane.xlu1 %954 }
 0x500   : > { %1837 = vrcp.f32 %v955_v41  ;;  %v1820_v41 = vld [vmem:[%s2458_s12 + $0x10] sm:$0xff]  }
 0x501   : > { %1839 = vrcp.f32 %v1077_v36  ;;  %v1572_v36 = vld [vmem:[#allocation8] ss:$0 sm:$0xff] }
 0x503   : > { %v960_v42 = vpop.permute.xlu1 %959 }
 0x504   : > { %v965_v43 = vsel %vm724_vm3, %v960_v42, 0  ;;  %v1821_v42 = vld [vmem:[%s2458_s12 + $0x8] sm:$0xff]  }
 0x505   : > { %1660 = vmatpush3.bf16.msra.mxu0 %v965_v43  ;;  %v1822_v43 = vld [vmem:[%s2458_s12] sm:$0xff]  }
 0x506   : > { %1671 = vmatprep.subr.bf16.mxu0 %v2056_v8 }
 0x507   : > { %v1082_v46 = vpop.permute.xlu1 %1081 }
 0x508   : > { %v1087_v49 = vsel %vm724_vm3, %v1082_v46, 0 }
 0x50d   : > { %v1838_v44 = vpop.eup %1837 }
 0x50e   : > { %v957_v45 = vmul.f32 %v1838_v44, %v1832_v27  ;;  %v1840_v48 = vpop.eup %1839  ;;  %v1573_v44 = vld [vmem:[#allocation11] ss:$0 sm:$0xff] }
 0x50f   : > { %v1079_v50 = vmul.f32 %v1840_v48, %v1830_v21 }
 0x510   : > { %v958_v47 = vpack.c.bf16 %v957_v45, %v957_v45 }
 0x511   : > { %v1080_v51 = vpack.c.bf16 %v1079_v50, %v1079_v50 }
 0x512   : > { %1662 = vmatmul.mubr.msk.bf16.vlgmr.msra.gmra.mxu0 %vm660_vm2, %v958_v47 }
 0x513   : > { %1672 = vmatpush3.bf16.msra.mxu0 %v1087_v49  ;;  %1673 = vmatprep.mubr.msk.bf16.mxu0 %vm2057_vm1, %v2056_v8 }
 0x514   : > { %1685 = vmatprep.subr.bf16.mxu0 %v2056_v8 }
 0x51a   : > { %1674 = vmatmul.mubr.msk.bf16.vlgmr.msra.gmra.mxu0 %vm660_vm2, %v1080_v51 }
 0x51b   : > { %1689 = vmatprep.mubr.msk.bf16.mxu0 %vm2057_vm1, %v2056_v8  ;;  %1686 = vmatpush3.bf16.msra.mxu0 %v1817_v30 }
 0x51c   : > { %1687 = vmatprep.subr.bf16.mxu0 %v2056_v8 }
 0x51f   : > { %1688 = vmatpush3.bf16.msra.mxu0 %v1818_v31 }
 0x59d   : > { %v762_v52 = vpop.f32.mrf.mxu0 }
 0x59e   : > { %v768_v53 = vpack.c.bf16 %v762_v52, %v762_v52 }
 0x59f   : > { %v1639_v54 = vpop.f32.mrf.mxu0 }
 0x5a0   : > { %770 = vst.msk [vmem:[#allocation2] sm:$0xf] %vm769_vm4, %v768_v53 }
 0x5a1   : > { %v765_v55 = vpop.f32.mrf.mxu0 }
 0x5a2   : > { %v1577_v55 = vld [vmem:[%s2459_s13] ss:$0 sm:$0xff] }
 0x5a3   : > { %v1640_v56 = vpop.f32.mrf.mxu0 }
 0x5ab   : > { %v879_v57 = vpop.f32.mrf.mxu0 }
 0x5ac   : > { %v1588_v58 = vpack.c.bf16 %v879_v57, %v879_v57 }
 0x5ad   : > { %v1651_v59 = vpop.f32.mrf.mxu0 }
 0x5ae   : > { %889 = vrot.lane.b32.xlu0 %v1588_v58, %s2069_s6  ;;  %s1981_s6 = scalar_lea.vmem %s1980_s18, 256 }
 0x5af   : > { %v882_v60 = vpop.f32.mrf.mxu0 }
 0x5b1   : > { %v1652_v61 = vpop.f32.mrf.mxu0 }
 0x5d2   : > { %v1001_v63 = vpop.f32.mrf.mxu0 }
 0x5d3   : > { %v1589_v2 = vpack.c.bf16 %v1001_v63, %v1001_v63 }
 0x5d4   : > { %v1663_v3 = vpop.f32.mrf.mxu0 }
 0x5d5   : > { %1011 = vrot.lane.b32.xlu1 %v1589_v2, %s2070_s27  ;;  %s540_s27 = sand.u32 1, %s2039_s30  }
 0x5d6   : > { %v1004_v4 = vpop.f32.mrf.mxu0  ;;  %s1395_s17 = scalar_lea.sflag [#allocation5], %s540_s27 }
 0x5d8   : > { %v1664_v5 = vpop.f32.mrf.mxu0 }
 0x5da   : > { %v1123_v6 = vpop.f32.mrf.mxu0 }
 0x5db   : > { %v1590_v7 = vpack.c.bf16 %v1123_v6, %v1123_v6 }
 0x5dc   : > { %v1675_v9 = vpop.f32.mrf.mxu0 }
 0x5dd   : > { %1133 = vrot.lane.b32.xlu0 %v1590_v7, %s2071_s25  ;;  %s1543_s25 = sshll.u32 %s540_s27, 3 }
 0x5de   : > { %v1126_v10 = vpop.f32.mrf.mxu0  ;;  %s542_s21 = scalar_lea.vmem [#allocation12], %s1543_s25 }
 0x5df   : > { %s1408_s19 = sshll.u32 %s542_s21, 4  ;;  %s2406_s19 = int_to_ptr.vmem [resolvable:$true] %s1408_s19 }
 0x5e0   : > { %v1676_v11 = vpop.f32.mrf.mxu0  ;;  %s1975_s22 = scalar_lea.vmem %s2406_s19, 128  ;;  %p1982_p5 = scmp.lt.s32.totalorder %s2406_s19, %s1980_s18 }
 0x5e1   : > { %p1976_p7 = scmp.ne.s32.totalorder %s2406_s19, %s1975_s22  ;;  %p1983_p6 = scmp.lt.s32.totalorder %s1981_s6, %s1975_s22 }
 0x5e3   : > { %p1977_p9 = pnand %p1976_p7, %p2490_p8  ;;  %p1984_p0 = por %p1983_p6, %p1982_p5 }
 0x5e5   : > { %p1978_p11 = pneg %p1977_p9 }
 0x5e7   : > { %p1985_p1 = pnand %p1984_p0, %p1978_p11 }
 0x620   : > { %v890_v12 = vpop.permute.xlu0 %889 }
 0x621   : > { %893 = vst.msk [vmem:[#allocation2] sm:$0xf] %vm892_vm5, %v890_v12 }
 0x647   : > { %v1012_v13 = vpop.permute.xlu1 %1011 }
 0x648   : > { %1015 = vst.msk [vmem:[#allocation2] sm:$0xf] %vm1014_vm6, %v1012_v13 }
 0x64f   : > { %v1134_v14 = vpop.permute.xlu0 %1133 }
 0x650   : > { %1137 = vst.msk [vmem:[#allocation2] sm:$0xf] %vm1136_vm7, %v1134_v14 }
 0x657   : > { %v1138_v15 = vld [vmem:[#allocation2] sm:$0xf] }
 0x658   : > { %1682 = vmatmul.mubr.msk.bf16.vlgmr.msra.gmra.mxu1 %vm556_vm0, %v1138_v15 }
 0x659   : > { %1701 = vmatprep.mubr.msk.bf16.mxu1 %vm2057_vm1, %v2056_v8  ;;  %1694 = vmatpush3.bf16.msra.mxu1 %v1819_v40 }
 0x65a   : > { %1695 = vmatprep.subr.bf16.mxu1 %v2056_v8 }
 0x65d   : > { %1696 = vmatpush3.bf16.msra.mxu1 %v1820_v41 }
 0x65e   : > { %1697 = vmatprep.subr.bf16.mxu1 %v2056_v8 }
 0x661   : > { %1698 = vmatpush3.bf16.msra.mxu1 %v1821_v42 }
 0x662   : > { %1699 = vmatprep.subr.bf16.mxu1 %v2056_v8 }
 0x665   : > { %1700 = vmatpush3.bf16.msra.mxu1 %v1822_v43 }
 0x718   : > { %v1199_v17 = vpop.f32.mrf.mxu1 }
 0x719   : > { %v1200_v18 = vadd.f32 %v1567_v16, %v1199_v17 }
 0x71a   : > { %v1683_v19 = vpop.f32.mrf.mxu1 }
 0x71b   : > { %v2369_v20 = vadd.f32 %v1200_v18, %v2272_v0 }
 0x71c   : > { %v1202_v21 = vpop.f32.mrf.mxu1 }
 0x71d   : > { %v1208_v22 = vsel %vm556_vm0, %v2369_v20, 0.0 }
 0x71e   : > { %1209 = vadd.xlane.f32.xlu1 %v1208_v22  ;;  %v1684_v23 = vpop.f32.mrf.mxu1 }
 0x7a7   : > { %v1210_v24 = vpop.xlane.xlu1 %1209 }
 0x7a8   : > { %v1211_v26 = vmul.f32 0.03125, %v1210_v24 }
 0x7aa   : > { %v1212_v27 = vsub.f32 %v2369_v20, %v1211_v26 }
 0x7ac   : > { %v1213_v28 = vmul.f32 %v1212_v27, %v1212_v27 }
 0x7ae   : > { %v1214_v29 = vsel %vm556_vm0, %v1213_v28, 0.0 }
 0x7af   : > { %1215 = vadd.xlane.f32.xlu0 %v1214_v29 }
 0x838   : > { %v1216_v0 = vpop.xlane.xlu0 %1215 }
 0x839   : > { %v1217_v32 = vmul.f32 0.03125, %v1216_v0 }
 0x83b   : > { %v1218_v33 = vadd.f32 1e-05, %v1217_v32 }
 0x83d   : > { %1841 = vrsqrt.f32 %v1218_v33 }
 0x84a   : > { %v1842_v34 = vpop.eup %1841 }
 0x84b   : > { %v1220_v25 = vmul.f32 %v1842_v34, %v1212_v27 }
 0x84d   : > { %v1227_v37 = vmul.f32 %v1571_v35, %v1220_v25 }
 0x84f   : > { %v1234_v38 = vadd.f32 %v1572_v36, %v1227_v37 }
 0x851   : > { %v1235_v39 = vpack.c.bf16 %v1234_v38, %v1234_v38 }
 0x853   : > { %1690 = vmatmul.mubr.msk.bf16.vlgmr.msra.gmra.mxu0 %vm556_vm0, %v1235_v39 }
 0x913   : > { %v1296_v45 = vpop.f32.mrf.mxu0 }
 0x914   : > { %v1297_v46 = vadd.f32 %v1573_v44, %v1296_v45 }
 0x915   : > { %v1691_v47 = vpop.f32.mrf.mxu0 }
 0x916   : > { %v1304_v48 = vmul.f32 0.70710677, %v1297_v46  ;;  %v1302_v52 = vmul.f32 0.5, %v1297_v46 }
 0x917   : > { %v1299_v49 = vpop.f32.mrf.mxu0 }
 0x918   : > { %1843 = verf.f32 %v1304_v48 }
 0x919   : > { %v1692_v50 = vpop.f32.mrf.mxu0 }
 0x925   : > { %v1844_v51 = vpop.eup %1843 }
 0x926   : > { %v1306_v53 = vadd.f32 1.0, %v1844_v51 }
 0x928   : > { %v1307_v54 = vmul.f32 %v1306_v53, %v1302_v52 }
 0x92a   : > { %v1308_v8 = vpack.c.bf16 %v1307_v54, %v1307_v54 }
 0x92c   : > { %1702 = vmatmul.mubr.msk.bf16.vlgmr.msra.gmra.mxu1 %vm1348_vm8, %v1308_v8 }
 0x9ec   : > { %v1386_v56 = vpop.f32.mrf.mxu1 }
 0x9ed   : > { %v1387_v57 = vadd.f32 %v1577_v55, %v1386_v56 }
 0x9ee   : > { %v1703_v58 = vpop.f32.mrf.mxu1 }
 0x9ef   : > { %v1392_v59 = vadd.f32 %v1387_v57, %v2369_v20 }
 0x9f0   : > { %v1389_v60 = vpop.f32.mrf.mxu1 }
 0x9f1   : > { %1393 = vst.msk [vmem:[%s542_s21] sm:$0xff] %vm556_vm0, %v1392_v59 }
 0x9f2   : > { %v1704_v61 = vpop.f32.mrf.mxu1 }
 0x9f3   : > { %1988 = shalt.err (!%p1985_p1)
}
 0x9f4   : > { %s1989_s25 = scalar_lea.hbm %s2404_s15, 128  ;;  %s1993_s16 = scalar_lea.hbm %s2460_s14, 256 }
 0x9f5   : > { %p1990_p13 = scmp.ne.s32.totalorder %s2404_s15, %s1989_s25  ;;  %p1994_p2 = scmp.lt.s32.totalorder %s2404_s15, %s2460_s14 }
 0x9f6   : > { %p1995_p12 = scmp.lt.s32.totalorder %s1993_s16, %s1989_s25 }
 0x9f7   : > { %p1991_p10 = pnand %p1990_p13, %p2490_p8 }
 0x9f8   : > { %p1996_p4 = por %p1995_p12, %p1994_p2 }
 0x9f9   : > { %p1992_p3 = pneg %p1991_p10 }
 0x9fb   : > { %p1997_p7 = pnand %p1996_p4, %p1992_p3 }
 0x9fd   : > { %2000 = shalt.err (!%p1997_p7)
}
 0x9fe   : > { %1725 = dma.vmem_to_hbm [thread:$0]  (%p2490_p8), %s2406_s19, 128, %s2404_s15, %s1395_s17  }
 0x9ff PF: > { %s2491_s24 = sld [smem:[#allocation19_spill]] }
 0xa00   : > { %s2492_s29 = sld [smem:[#allocation17_spill]] }
 0xa01   : > { %s2493_s22 = sld [smem:[#allocation22_spill]] }
 0xa05   : > { %p1757_p9 = scmp.ge.s32.totalorder %s2491_s24, 2 }
 0xa06   : > { %s1420_s26 = sand.u32 1, %s2492_s29  }
 0xa07   : > { %p2494_p11 = scmp.ne.s32.totalorder %s2493_s22, 0  ;;  %s1421_s18 = scalar_lea.sflag [#allocation5], %s1420_s26 }
 0xa09   : > { %p1744_p5 = pnand %p1757_p9, %p2494_p11 }
 0xa0b   : > { %p1745_p6 = pneg %p1744_p5 }
 0xa0d   : > { %2030 = dma.done.wait (%p1745_p6), %s1421_s18, 128  }
 0xa0e   : > { %2032 = vsyncadd (%p1745_p6), %s1421_s18, 4294967168  ;;  %s2495_s16 = sld [smem:[#allocation20_spill]]  ;;  %s2498_s29 = smov %s2039_s30 }
 0xa0f   : > { %s2496_s6 = sld [smem:[#allocation18_spill]] }
 0xa10   : > { %s2497_s15 = sld [smem:[#allocation21_spill]] }
 0xa14   : > { %p27_p0 = scmp.ge.s32.totalorder %s2495_s16, 4  }
 0xa15   : > { %s2499_s30 = smov %s2496_s6 }
 0xa16   :  { %29 = sbr.rel (!%p27_p0) target bundleno = 8 (0x8), region = 138 }
 0xa1b   :  { %1426 = vsyncpa [#allocation4], 1 }
 0xa1c   :  { %1428 = vsyncpa [#allocation4 + $0x1], 1 }
 0xa1d   :  { %1429 = vsyncpa [#allocation7], 1 }
 0xa1e   :  { %1430 = vsyncpa [#allocation10], 1 }
 0xa1f   :  { %1431 = vsyncpa [#allocation5], 1 }
 0xa20   :  { %1433 = vsyncpa [#allocation5 + $0x1], 1 }

// kernel: tpu_custom_call.1
= control target key start
LH: loop header
LB: loop body
LE: loop exit
PB: predicated region body
PF: predicated region fallthrough
CT: control target
= control target key end

     0   :  { %s2446_s0 = inlined_call_operand.vmem [shape: f32[2,8,32], index: 0, kind: input, shape index: {}]   ;;  %s2447_s1 = inlined_call_operand.vmem [shape: bf16[2,4,8,8], index: 1, kind: input, shape index: {}]   ;;  %s2448_s2 = inlined_call_operand.vmem [shape: f32[1,32], index: 2, kind: input, shape index: {}]   ;;  %s2449_s3 = inlined_call_operand.vmem [shape: f32[1,32], index: 3, kind: input, shape index: {}]   ;;  %s2450_s4 = inlined_call_operand.hbm [shape: bf16[32,96], index: 4, kind: input, shape index: {}]   ;;  %s2451_s5 = inlined_call_operand.vmem [shape: f32[1,96], index: 5, kind: input, shape index: {}]   ;;  %s2452_s6 = inlined_call_operand.hbm [shape: bf16[32,32], index: 6, kind: input, shape index: {}]   ;;  %s2453_s7 = inlined_call_operand.vmem [shape: f32[1,32], index: 7, kind: input, shape index: {}]   ;;  %s2454_s8 = inlined_call_operand.vmem [shape: f32[1,32], index: 8, kind: input, shape index: {}]   ;;  %s2455_s9 = inlined_call_operand.hbm [shape: f32[1,32], index: 9, kind: input, shape index: {}]   ;;  %s2456_s10 = inlined_call_operand.hbm [shape: bf16[32,64], index: 10, kind: input, shape index: {}]   ;;  %s2457_s11 = inlined_call_operand.hbm [shape: f32[1,64], index: 11, kind: input, shape index: {}]   ;;  %s2458_s12 = inlined_call_operand.vmem [shape: bf16[64,32], index: 12, kind: input, shape index: {}]   ;;  %s2459_s13 = inlined_call_operand.vmem [shape: f32[1,32], index: 13, kind: input, shape index: {}]   ;;  %s2460_s14 = inlined_call_operand.hbm [shape: f32[2,8,32], index: 14, kind: output, shape index: {}]  }
   0x1   :  { %2470 = sst [smem:[#allocation23_spill]] %s2452_s6 }
   0x2   :  { %19 = vsyncpa [#allocation4], 0 }
   0x3   :  { %20 = vsyncpa [#allocation7], 0 }
   0x4   :  { %21 = vsyncpa [#allocation10], 0 }
   0x5   :  { %22 = vsyncpa [#allocation5], 0 }
   0x6   :  { %24 = vsyncpa [#allocation5 + $0x1], 0  ;;  %s2148_s29 = smov 0   ;;  %s2150_s30 = smov 0  }
   0x7   :  { %s2152_s15 = smov 0   ;;  %s2154_s16 = smov 0  }
   0x8 LB: > { %2471 = sst [smem:[#allocation17_spill]] %s2035_s29  ;;  %s2169_s17 = sadd.s32 4294967295, %s2047_s16   ;;  %s2047_s16 = sphi %s2154_s16, %s2495_s16   ;;  %s2043_s15 = sphi %s2152_s15, %s2497_s15   ;;  %s2039_s30 = sphi %s2150_s30, %s2499_s30   ;;  %s2035_s29 = sphi %s2148_s29, %s2498_s29  }
   0x9   : > { %2472 = sst [smem:[#allocation18_spill]] %s2043_s15  ;;  %s1529_s18 = sadd.s32 4294967294, %s2047_s16  }
   0xa   : > { %2473 = sst [smem:[#allocation19_spill]] %s2047_s16  ;;  %s2173_s19 = sadd.s32 1, %s2047_s16  }
   0xb   : > { %2474 = sst [smem:[#allocation20_spill]] %s2173_s19  ;;  %s341_s20 = sadd.s32 1, %s2043_s15 }
   0xc   : > { %s338_s21 = ssub.s32 %s2047_s16, %s2173_s19  ;;  %p351_p0 = scmp.ne.s32.totalorder %s2043_s15, %s2039_s30 }
   0xd   : > { %p339_p1 = scmp.eq.s32.totalorder %s338_s21, 0  ;;  %p352_p2 = scmp.eq.s32.totalorder %s2169_s17, 1 }
   0xe   : > { %p357_p3 = scmp.ne.s32.totalorder %s2039_s30, %s2035_s29  ;;  %p358_p4 = scmp.eq.s32.totalorder %s1529_s18, 1 }
   0xf   : > { %s2184_s22 = scalar_select %p339_p1, %s2043_s15, %s341_s20  }
  0x10   : > { %p2186_p5 = por %p352_p2, %p351_p0  ;;  %p2190_p6 = por %p358_p4, %p357_p3 }
  0x11   : > { %2475 = sst [smem:[#allocation21_spill]] %s2184_s22  ;;  %p1530_p7 = scmp.ge.s32.totalorder %s2047_s16, 1 }
  0x12   : > { %s2476_s23 = scalar_select %p2186_p5, 1, 0 }
  0x13   : > { %s2477_s24 = scalar_select %p2190_p6, 1, 0 }
  0x14   : > { %p365_p8 = scmp.lt.s32.totalorder %s2047_s16, 3  ;;  %p2466_p9 = scmp.eq.s32.totalorder %s2169_s17, 0 }
  0x15   : > { %2478 = sst [smem:[#allocation22_spill]] %s2477_s24  ;;  %s2049_s26 = smov [#allocation6]  }
  0x16   : > { %p2197_p10 = pnand %p1530_p7, %p365_p8  ;;  %s399_s27 = sshll.u32 %s2049_s26, 4  ;;  %s400_s27 = int_to_ptr.vmem [resolvable:$true] %s399_s27 }
  0x17   : > { %s2050_s18 = smov [#allocation9]   ;;  %s2051_s21 = smov [#allocation3]  }
  0x18   : > { %s2479_s25 = scalar_select %p2197_p10, 1, 0 }
  0x19   : > { %p1727_p11 = pneg %p2197_p10  ;;  %s429_s20 = sshll.u32 %s2050_s18, 4  ;;  %s430_s20 = int_to_ptr.vmem [resolvable:$true] %s429_s20 }
  0x1a   : > { %s383_s22 = sshll.u32 %s2051_s21, 4  ;;  %s1856_s19 = scalar_lea.vmem %s400_s27, 256  ;;  %s384_s22 = int_to_ptr.vmem [resolvable:$true] %s383_s22 }
  0x1b   : > { %p2205_p12 = pnand %p2466_p9, %p1727_p11  ;;  %p1857_p0 = scmp.ne.s32.totalorder %s400_s27, %s1856_s19 }
  0x1c   : > { %p1864_p3 = scmp.lt.s32.totalorder %s400_s27, %s400_s27  ;;  %p1865_p4 = scmp.lt.s32.totalorder %s1856_s19, %s1856_s19 }
  0x1d   : > { %p2211_p13 = pneg %p2205_p12 }
  0x1e   : > { %p1866_p7 = por %p1865_p4, %p1864_p3 }
  0x1f   : > { %p1859_p1 = pnand %p1857_p0, %p2211_p13 }
  0x21   : > { %p1860_p2 = pneg %p1859_p1 }
  0x23   : > { %p1867_p8 = pnand %p1866_p7, %p1860_p2 }
  0x25   : > { %1870 = shalt.err (!%p1867_p8)
}
  0x26   : > { %s2052_s26 = smov 64   ;;  %s2053_s18 = smov 4  }
  0x27   : > { %s2482_s6 = sld [smem:[#allocation23_spill]]  ;;  %s1882_s29 = scalar_lea.vmem %s430_s20, 256 }
  0x28   : > { %p1883_p11 = scmp.ne.s32.totalorder %s430_s20, %s1882_s29  ;;  %p1890_p1 = scmp.lt.s32.totalorder %s430_s20, %s430_s20 }
  0x29   : > { %p1891_p6 = scmp.lt.s32.totalorder %s1882_s29, %s1882_s29 }
  0x2a   : > { %p1885_p9 = pnand %p1883_p11, %p2211_p13 }
  0x2b   : > { %p1892_p5 = por %p1891_p6, %p1890_p1 }
  0x2c   : > { %p1886_p0 = pneg %p1885_p9 }
  0x2d   : > { %1733 = dma.hbm_to_vmem [thread:$0]  (!%p2205_p12), %s2482_s6, 256, %s400_s27, [#allocation7], %s2052_s26, %s2052_s26, %s2053_s18  }
  0x2e   : > { %p1893_p3 = pnand %p1892_p5, %p1886_p0 }
  0x30   : > { %1896 = shalt.err (!%p1893_p3)
}
  0x31   : > { %1739 = dma.hbm_to_vmem [thread:$0]  (!%p2205_p12), %s2456_s10, 256, %s430_s20, [#allocation10], %s2052_s26, %s2052_s26, %s2053_s18  }
  0x32   : > { %s1908_s24 = scalar_lea.vmem %s384_s22, 256  ;;  %p1916_p8 = scmp.lt.s32.totalorder %s384_s22, %s384_s22 }
  0x33   : > { %p1909_p2 = scmp.ne.s32.totalorder %s384_s22, %s1908_s24  ;;  %p1917_p9 = scmp.lt.s32.totalorder %s1908_s24, %s1908_s24 }
  0x35   : > { %p1911_p4 = pnand %p1909_p2, %p2211_p13  ;;  %p1918_p11 = por %p1917_p9, %p1916_p8 }
  0x37   : > { %p1912_p7 = pneg %p1911_p4 }
  0x39   : > { %p1919_p10 = pnand %p1918_p11, %p1912_p7 }
  0x3b   : > { %1922 = shalt.err (!%p1919_p10)
}
  0x3c   : > { %1730 = dma.hbm_to_vmem [thread:$0]  (!%p2205_p12), %s2450_s4, 256, %s384_s22, [#allocation4], %s2052_s26, %s2052_s26, %s2053_s18  }
  0x3d   : > { %s2054_s16 = smov [#allocation8]   ;;  %s2055_s21 = smov [#allocation11]  }
  0x3e   : > { %s419_s20 = sshll.u32 %s2054_s16, 4  ;;  %s443_s19 = sshll.u32 %s2055_s21, 4  ;;  %s420_s20 = int_to_ptr.vmem [resolvable:$true] %s419_s20  ;;  %s444_s19 = int_to_ptr.vmem [resolvable:$true] %s443_s19 }
  0x3f   : > { %s1934_s6 = scalar_lea.vmem %s420_s20, 16  ;;  %s1941_s24 = scalar_lea.vmem %s420_s20, 32 }
  0x40   : > { %p1935_p5 = scmp.ne.s32.totalorder %s420_s20, %s1934_s6  ;;  %p1942_p1 = scmp.lt.s32.totalorder %s420_s20, %s420_s20 }
  0x41   : > { %p1943_p10 = scmp.lt.s32.totalorder %s1941_s24, %s1934_s6 }
  0x42   : > { %p1937_p6 = pnand %p1935_p5, %p2211_p13 }
  0x43   : > { %p1944_p3 = por %p1943_p10, %p1942_p1 }
  0x44   : > { %p1938_p0 = pneg %p1937_p6 }
  0x46   : > { %p1945_p2 = pnand %p1944_p3, %p1938_p0 }
  0x48   : > { %1948 = shalt.err (!%p1945_p2)
}
  0x49   : > { %1736 = dma.hbm_to_vmem [thread:$0]  (!%p2205_p12), %s2455_s9, 16, %s420_s20, [#allocation7]  }
  0x4a   : > { %s1960_s26 = scalar_lea.vmem %s444_s19, 16  ;;  %s1967_s18 = scalar_lea.vmem %s444_s19, 32 }
  0x4b   : > { %p1961_p4 = scmp.ne.s32.totalorder %s444_s19, %s1960_s26  ;;  %p1968_p9 = scmp.lt.s32.totalorder %s444_s19, %s444_s19 }
  0x4c   : > { %p1969_p11 = scmp.lt.s32.totalorder %s1967_s18, %s1960_s26 }
  0x4d   : > { %p1963_p7 = pnand %p1961_p4, %p2211_p13 }
  0x4e   : > { %p1970_p5 = por %p1969_p11, %p1968_p9 }
  0x4f   : > { %p1964_p8 = pneg %p1963_p7 }
  0x51   : > { %p1971_p6 = pnand %p1970_p5, %p1964_p8 }
  0x53   : > { %1974 = shalt.err (!%p1971_p6)
}
  0x54   : > { %1742 = dma.hbm_to_vmem [thread:$0]  (!%p2205_p12), %s2457_s11, 16, %s444_s19, [#allocation10]  }
  0x55   : > { %p2483_p0 = scmp.ne.s32.totalorder %s2479_s25, 0 }
  0x56   : > { %p2484_p1 = scmp.eq.s32.totalorder (!%p2483_p0), %s2169_s17, 0 }
  0x57   : > { %477 = sbr.rel (%p2483_p0) target bundleno = 2559 (0x9ff), region = 76 }
  0x5c   : > { %2018 = dma.done.wait (%p2484_p1), [#allocation4], 256   ;;  %p2485_p13 = pmov %p2484_p1 }
  0x5d   : > { %p2486_p10 = pmov %p2484_p1 }
  0x5e   : > { %2020 = vsyncadd (%p2485_p13), [#allocation4], 4294967040 }
  0x5f   : > { %2022 = dma.done.wait (%p2486_p10), [#allocation7], 272   ;;  %p2487_p3 = pmov %p2484_p1 }
  0x60   : > { %p2488_p2 = pmov %p2484_p1 }
  0x61   : > { %2024 = vsyncadd (%p2487_p3), [#allocation7], 4294967024 }
  0x62   : > { %2026 = dma.done.wait (%p2488_p2), [#allocation10], 272   ;;  %p2489_p12 = pmov %p2484_p1 }
  0x63   : > { %p543_p4 = scmp.lt.s32.totalorder %s2169_s17, 1  ;;  %vm556_vm0 = vcmask 261120   ;;  %v1813_v7 = vld [vmem:[#allocation3 + $0x8] sm:$0xff]   ;;  %v2056_v8 = vmov 0.0   ;;  %vm2057_vm1 = vmmov 0   ;;  %v1814_v9 = vld [vmem:[#allocation3] sm:$0xff]  }
  0x64   : > { %2028 = vsyncadd (%p2489_p12), [#allocation10], 4294967024  ;;  %1621 = vmatprep.subr.bf16.mxu0 %v2056_v8  ;;  %1625 = vmatprep.mubr.msk.bf16.mxu0 %vm2057_vm1, %v2056_v8  ;;  %v1547_v14 = vld [vmem:[%s2448_s2] ss:$0 sm:$0xff]  ;;  %s2058_s18 = smov 96   ;;  %s2059_s6 = smov 120  }
  0x65   : > { %s2266_s15 = scalar_select %p543_p4, %s2169_s17, 1  ;;  %1622 = vmatpush3.bf16.msra.mxu0 %v1813_v7  ;;  %1629 = vmatprep.subr.bf16.mxu1 %v2056_v8  ;;  %v1548_v16 = vld [vmem:[%s2449_s3] ss:$0 sm:$0xff]  ;;  %vm660_vm2 = vcmask 64512   ;;  %vm724_vm3 = vcmask 1043456   ;;  %vm769_vm4 = vcmask 60416  }
  0x66   : > { %1623 = vmatprep.subr.bf16.mxu0 %v2056_v8  ;;  %1631 = vmatprep.mubr.msk.bf16.mxu1 %vm2057_vm1, %v2056_v8  ;;  %v1549_v20 = vld [vmem:[%s2451_s5] ss:$0 sm:$0xff]  ;;  %s2060_s27 = smov 88   ;;  %s2062_s28 = smov 112   ;;  %vm892_vm5 = vcmask 126016   ;;  %vm1014_vm6 = vcmask 191616  }
  0x67   : > { %s1544_s25 = sshll.u32 %s2266_s15, 3  ;;  %s2063_s16 = smov 72   ;;  %vm1136_vm7 = vcmask 257216   ;;  %vm1348_vm8 = vcmask 523264  }
  0x68   : > { %s546_s20 = scalar_lea.vmem %s2446_s0, %s1544_s25  ;;  %s2061_s25 = smov 80  }
  0x69   : > { %v2272_v0 = vld [vmem:[%s546_s20] sm:$0xff]  ;;  %1624 = vmatpush3.bf16.msra.mxu0 %v1814_v9  ;;  %s2064_s20 = smov 104   ;;  %s1587_s21 = sshll.u32 %s2266_s15, 4 }
  0x6a   : > { %v557_v1 = vsel %vm556_vm0, %v2272_v0, 0.0  ;;  %1635 = vmatprep.subr.bf16.mxu0 %v2056_v8  ;;  %s551_s29 = scalar_lea.vmem %s2447_s1, %s1587_s21  ;;  %s2065_s15 = smov 64  }
  0x6b   : > { %558 = vadd.xlane.f32.xlu0 %v557_v1  ;;  %v655_v40 = vld [vmem:[%s551_s29] sm:$0xff]   ;;  %v1559_v52 = vld [vmem:[%s551_s29 + $0x8] sm:$0xff]   ;;  %s2066_s22 = smov 56   ;;  %s2067_s26 = smov 48  }
  0x6c   : > { %v656_v41 = vunpack.c.l.bf16 %v655_v40  ;;  %v773_v47 = vunpack.c.h.bf16 %v655_v40  ;;  %v896_v55 = vunpack.c.l.bf16 %v1559_v52  ;;  %v1018_v62 = vunpack.c.h.bf16 %v1559_v52  ;;  %p2490_p8 = scmp.ne.s32.totalorder %s2476_s23, 0 }
  0xf4   : > { %v559_v2 = vpop.xlane.xlu0 %558 }
  0xf5   : > { %v561_v3 = vmul.f32 0.03125, %v559_v2 }
  0xf7   : > { %v562_v4 = vsub.f32 %v2272_v0, %v561_v3 }
  0xf9   : > { %v563_v5 = vmul.f32 %v562_v4, %v562_v4 }
  0xfb   : > { %v564_v6 = vsel %vm556_vm0, %v563_v5, 0.0 }
  0xfc   : > { %565 = vadd.xlane.f32.xlu0 %v564_v6 }
 0x185   : > { %v566_v10 = vpop.xlane.xlu0 %565 }
 0x186   : > { %v567_v11 = vmul.f32 0.03125, %v566_v10 }
 0x188   : > { %v568_v12 = vadd.f32 1e-05, %v567_v11 }
 0x18a   : > { %1823 = vrsqrt.f32 %v568_v12 }
 0x197   : > { %v1824_v13 = vpop.eup %1823 }
 0x198   : > { %v570_v15 = vmul.f32 %v1824_v13, %v562_v4 }
 0x19a   : > { %v577_v17 = vmul.f32 %v1547_v14, %v570_v15 }
 0x19c   : > { %v584_v18 = vadd.f32 %v1548_v16, %v577_v17 }
 0x19e   : > { %v585_v19 = vpack.c.bf16 %v584_v18, %v584_v18 }
 0x1a0   : > { %1626 = vmatmul.mubr.msk.bf16.vlgmr.msra.gmra.mxu0 %vm556_vm0, %v585_v19 }
 0x1a1   : > { %1637 = vmatprep.mubr.msk.bf16.mxu0 %vm2057_vm1, %v2056_v8 }
 0x260   : > { %v646_v21 = vpop.f32.mrf.mxu0 }
 0x261   : > { %v647_v22 = vadd.f32 %v1549_v20, %v646_v21 }
 0x262   : > { %v1627_v23 = vpop.f32.mrf.mxu0 }
 0x263   : > { %v652_v24 = vmul.f32 0.35355338, %v647_v22  ;;  %v2298_v25 = vpack.c.bf16 %v647_v22, %v647_v22 }
 0x264   : > { %v649_v26 = vpop.f32.mrf.mxu0 }
 0x265   : > { %v653_v27 = vpack.c.bf16 %v652_v24, %v652_v24  ;;  %658 = vrot.lane.b32.xlu1 %v2298_v25, %s2058_s18  ;;  %s2068_s18 = smov 40  }
 0x266   : > { %v1628_v28 = vpop.f32.mrf.mxu0 }
 0x267   : > { %775 = vrot.lane.b32.xlu0 %v653_v27, %s2059_s6  ;;  %s2069_s6 = smov 8  }
 0x269   : > { %777 = vrot.lane.b32.xlu1 %v2298_v25, %s2060_s27  ;;  %s2070_s27 = smov 16  }
 0x26d   : > { %899 = vrot.lane.b32.xlu1 %v2298_v25, %s2061_s25  ;;  %s2071_s25 = smov 24  }
 0x271   : > { %897 = vrot.lane.b32.xlu1 %v653_v27, %s2062_s28 }
 0x275   : > { %1021 = vrot.lane.b32.xlu1 %v2298_v25, %s2063_s16 }
 0x279   : > { %1019 = vrot.lane.b32.xlu1 %v653_v27, %s2064_s20  ;;  %s1584_s20 = sshll.u32 %s2169_s17, 7 }
 0x2d7   : > { %v659_v29 = vpop.permute.xlu1 %658 }
 0x2d8   : > { %v665_v30 = vsel %vm660_vm2, %v659_v29, 0 }
 0x2d9   : > { %1630 = vmatpush3.bf16.xpose.msra.mxu1 %v665_v30  ;;  %v776_v34 = vpop.permute.xlu0 %775 }
 0x2da   : > { %1641 = vmatprep.subr.bf16.mxu1 %v2056_v8 }
 0x2db   : > { %v778_v31 = vpop.permute.xlu1 %777 }
 0x2dc   : > { %v783_v32 = vsel %vm660_vm2, %v778_v31, 0 }
 0x2df   : > { %v900_v33 = vpop.permute.xlu1 %899 }
 0x2e0   : > { %1632 = vmatmul.mubr.msk.bf16.vlgmr.msra.gmra.mxu1 %vm660_vm2, %v653_v27  ;;  %v905_v36 = vsel %vm660_vm2, %v900_v33, 0 }
 0x2e1   : > { %1642 = vmatpush3.bf16.xpose.msra.mxu1 %v783_v32  ;;  %1643 = vmatprep.mubr.msk.bf16.mxu1 %vm2057_vm1, %v2056_v8 }
 0x2e2   : > { %1653 = vmatprep.subr.bf16.mxu1 %v2056_v8 }
 0x2e3   : > { %v898_v35 = vpop.permute.xlu1 %897 }
 0x2e7   : > { %v1022_v37 = vpop.permute.xlu1 %1021 }
 0x2e8   : > { %1644 = vmatmul.mubr.msk.bf16.vlgmr.msra.gmra.mxu1 %vm660_vm2, %v776_v34  ;;  %v1027_v38 = vsel %vm660_vm2, %v1022_v37, 0 }
 0x2e9   : > { %1654 = vmatpush3.bf16.xpose.msra.mxu1 %v905_v36  ;;  %1655 = vmatprep.mubr.msk.bf16.mxu1 %vm2057_vm1, %v2056_v8 }
 0x2ea   : > { %1665 = vmatprep.subr.bf16.mxu1 %v2056_v8 }
 0x2eb   : > { %v1020_v39 = vpop.permute.xlu1 %1019 }
 0x2f0   : > { %1656 = vmatmul.mubr.msk.bf16.vlgmr.msra.gmra.mxu1 %vm660_vm2, %v898_v35 }
 0x2f1   : > { %1666 = vmatpush3.bf16.xpose.msra.mxu1 %v1027_v38  ;;  %1667 = vmatprep.mubr.msk.bf16.mxu1 %vm2057_vm1, %v2056_v8 }
 0x2f2   : > { %1677 = vmatprep.subr.bf16.mxu1 %v2056_v8 }
 0x2f8   : > { %1668 = vmatmul.mubr.msk.bf16.vlgmr.msra.gmra.mxu1 %vm660_vm2, %v1020_v39 }
 0x2f9   : > { %1681 = vmatprep.mubr.msk.bf16.mxu1 %vm2057_vm1, %v2056_v8 }
 0x3a0   : > { %v701_v42 = vpop.f32.mrf.mxu1 }
 0x3a1   : > { %v702_v43 = vadd.f32 %v701_v42, %v656_v41 }
 0x3a2   : > { %v1633_v44 = vpop.f32.mrf.mxu1 }
 0x3a3   : > { %v707_v45 = vsel %vm660_vm2, %v702_v43, -inf }
 0x3a4   : > { %708 = vmax.xlane.f32.xlu1 %v707_v45  ;;  %v704_v46 = vpop.f32.mrf.mxu1 }
 0x3a6   : > { %v1634_v48 = vpop.f32.mrf.mxu1 }
 0x3a8   : > { %v819_v49 = vpop.f32.mrf.mxu1 }
 0x3a9   : > { %v820_v50 = vadd.f32 %v819_v49, %v773_v47 }
 0x3aa   : > { %v1645_v51 = vpop.f32.mrf.mxu1 }
 0x3ab   : > { %v825_v53 = vsel %vm660_vm2, %v820_v50, -inf }
 0x3ac   : > { %826 = vmax.xlane.f32.xlu0 %v825_v53  ;;  %v822_v54 = vpop.f32.mrf.mxu1 }
 0x3ae   : > { %v1646_v56 = vpop.f32.mrf.mxu1 }
 0x3b0   : > { %v941_v57 = vpop.f32.mrf.mxu1 }
 0x3b1   : > { %v942_v58 = vadd.f32 %v941_v57, %v896_v55 }
 0x3b2   : > { %v1657_v59 = vpop.f32.mrf.mxu1 }
 0x3b3   : > { %v947_v60 = vsel %vm660_vm2, %v942_v58, -inf }
 0x3b4   : > { %948 = vmax.xlane.f32.xlu1 %v947_v60  ;;  %v944_v61 = vpop.f32.mrf.mxu1 }
 0x3b6   : > { %v1658_v63 = vpop.f32.mrf.mxu1 }
 0x3b8   : > { %v1063_v1 = vpop.f32.mrf.mxu1 }
 0x3b9   : > { %v1064_v2 = vadd.f32 %v1063_v1, %v1018_v62  ;;  %v1815_v62 = vld [vmem:[#allocation6 + $0x8] sm:$0xff]   ;;  %v1816_v1 = vld [vmem:[#allocation6] sm:$0xff]  }
 0x3ba   : > { %v1669_v3 = vpop.f32.mrf.mxu1  ;;  %1678 = vmatpush3.bf16.msra.mxu1 %v1815_v62 }
 0x3bb   : > { %v1069_v4 = vsel %vm660_vm2, %v1064_v2, -inf  ;;  %1679 = vmatprep.subr.bf16.mxu1 %v2056_v8 }
 0x3bc   : > { %1070 = vmax.xlane.f32.xlu0 %v1069_v4  ;;  %v1066_v5 = vpop.f32.mrf.mxu1 }
 0x3be   : > { %v1670_v6 = vpop.f32.mrf.mxu1  ;;  %1680 = vmatpush3.bf16.msra.mxu1 %v1816_v1 }
 0x3bf   : > { %1693 = vmatprep.subr.bf16.mxu1 %v2056_v8 }
 0x42d   : > { %v709_v7 = vpop.xlane.xlu1 %708 }
 0x42e   : > { %v710_v9 = vsub.f32 %v702_v43, %v709_v7 }
 0x430   : > { %v711_v10 = vmul.f32 1.442695, %v710_v9 }
 0x432   : > { %1825 = vpow2.f32 %v711_v10 }
 0x435   : > { %v827_v11 = vpop.xlane.xlu0 %826 }
 0x436   : > { %v828_v12 = vsub.f32 %v820_v50, %v827_v11 }
 0x438   : > { %v829_v13 = vmul.f32 1.442695, %v828_v12 }
 0x43a   : > { %1827 = vpow2.f32 %v829_v13 }
 0x43d   : > { %v949_v23 = vpop.xlane.xlu1 %948 }
 0x43e   : > { %v950_v24 = vsub.f32 %v942_v58, %v949_v23 }
 0x43f   : > { %v1826_v14 = vpop.eup %1825 }
 0x440   : > { %v713_v15 = vsel %vm660_vm2, %v1826_v14, 0.0  ;;  %v951_v26 = vmul.f32 1.442695, %v950_v24 }
 0x441   : > { %714 = vadd.xlane.f32.xlu1 %v713_v15 }
 0x445   : > { %v1071_v16 = vpop.xlane.xlu0 %1070 }
 0x446   : > { %v1072_v17 = vsub.f32 %v1064_v2, %v1071_v16  ;;  %v1567_v16 = vld [vmem:[%s2453_s7] ss:$0 sm:$0xff] }
 0x447   : > { %v1828_v18 = vpop.eup %1827 }
 0x448   : > { %v1073_v19 = vmul.f32 1.442695, %v1072_v17  ;;  %v831_v20 = vsel %vm660_vm2, %v1828_v18, 0.0 }
 0x449   : > { %832 = vadd.xlane.f32.xlu0 %v831_v20 }
 0x44a   : > { %1829 = vpow2.f32 %v1073_v19 }
 0x44b   : > { %1831 = vpow2.f32 %v951_v26 }
 0x452   : > { %719 = vrot.lane.b32.xlu1 %v2298_v25, %s2065_s15  ;;  %s2404_s15 = scalar_lea.hbm %s2460_s14, %s1584_s20 }
 0x457   : > { %v1830_v21 = vpop.eup %1829 }
 0x458   : > { %v1075_v22 = vsel %vm660_vm2, %v1830_v21, 0.0  ;;  %v1832_v27 = vpop.eup %1831 }
 0x459   : > { %1076 = vadd.xlane.f32.xlu0 %v1075_v22  ;;  %v953_v28 = vsel %vm660_vm2, %v1832_v27, 0.0 }
 0x46f   : > { %837 = vrot.lane.b32.xlu0 %v2298_v25, %s2066_s22 }
 0x476   : > { %954 = vadd.xlane.f32.xlu1 %v953_v28 }
 0x487   : > { %959 = vrot.lane.b32.xlu1 %v2298_v25, %s2067_s26  ;;  %s2072_s26 = smov [#allocation12]  }
 0x48b   : > { %1081 = vrot.lane.b32.xlu1 %v2298_v25, %s2068_s18  ;;  %s1979_s18 = sshll.u32 %s2072_s26, 4  ;;  %s1980_s18 = int_to_ptr.vmem [resolvable:$false] %s1979_s18 }
 0x4ca   : > { %v715_v29 = vpop.xlane.xlu1 %714 }
 0x4cb   : > { %1833 = vrcp.f32 %v715_v29 }
 0x4ce   : > { %v720_v30 = vpop.permute.xlu1 %719 }
 0x4cf   : > { %v726_v31 = vsel %vm724_vm3, %v720_v30, 0  ;;  %v1817_v30 = vld [vmem:[#allocation9 + $0x8] sm:$0xff]  }
 0x4d0   : > { %1636 = vmatpush3.bf16.msra.mxu0 %v726_v31  ;;  %v1818_v31 = vld [vmem:[#allocation9] sm:$0xff]  }
 0x4d1   : > { %1647 = vmatprep.subr.bf16.mxu0 %v2056_v8 }
 0x4d2   : > { %v833_v32 = vpop.xlane.xlu0 %832 }
 0x4d3   : > { %1835 = vrcp.f32 %v833_v32 }
 0x4d8   : > { %v1834_v33 = vpop.eup %1833 }
 0x4d9   : > { %v717_v34 = vmul.f32 %v1834_v33, %v1826_v14 }
 0x4db   : > { %v718_v35 = vpack.c.bf16 %v717_v34, %v717_v34 }
 0x4dd   : > { %1638 = vmatmul.mubr.msk.bf16.vlgmr.msra.gmra.mxu0 %vm660_vm2, %v718_v35  ;;  %v1571_v35 = vld [vmem:[%s2454_s8] ss:$0 sm:$0xff] }
 0x4de   : > { %1649 = vmatprep.mubr.msk.bf16.mxu0 %vm2057_vm1, %v2056_v8 }
 0x4e0   : > { %v1836_v25 = vpop.eup %1835 }
 0x4e1   : > { %v835_v37 = vmul.f32 %v1836_v25, %v1828_v18 }
 0x4e2   : > { %v1077_v36 = vpop.xlane.xlu0 %1076 }
 0x4e3   : > { %v836_v40 = vpack.c.bf16 %v835_v37, %v835_v37 }
 0x4e6   : > { %v838_v38 = vpop.permute.xlu0 %837 }
 0x4e7   : > { %v843_v39 = vsel %vm724_vm3, %v838_v38, 0 }
 0x4e8   : > { %1648 = vmatpush3.bf16.msra.mxu0 %v843_v39 }
 0x4e9   : > { %1659 = vmatprep.subr.bf16.mxu0 %v2056_v8 }
 0x4eb   : > { %1650 = vmatmul.mubr.msk.bf16.vlgmr.msra.gmra.mxu0 %vm660_vm2, %v836_v40  ;;  %v1819_v40 = vld [vmem:[%s2458_s12 + $0x18] sm:$0xff]  }
 0x4ec   : > { %1661 = vmatprep.mubr.msk.bf16.mxu0 %vm2057_vm1, %v2056_v8 }
 0x4ff   : > { %v955_v41 = vpop.xlane.xlu1 %954 }
 0x500   : > { %1837 = vrcp.f32 %v955_v41  ;;  %v1820_v41 = vld [vmem:[%s2458_s12 + $0x10] sm:$0xff]  }
 0x501   : > { %1839 = vrcp.f32 %v1077_v36  ;;  %v1572_v36 = vld [vmem:[#allocation8] ss:$0 sm:$0xff] }
 0x503   : > { %v960_v42 = vpop.permute.xlu1 %959 }
 0x504   : > { %v965_v43 = vsel %vm724_vm3, %v960_v42, 0  ;;  %v1821_v42 = vld [vmem:[%s2458_s12 + $0x8] sm:$0xff]  }
 0x505   : > { %1660 = vmatpush3.bf16.msra.mxu0 %v965_v43  ;;  %v1822_v43 = vld [vmem:[%s2458_s12] sm:$0xff]  }
 0x506   : > { %1671 = vmatprep.subr.bf16.mxu0 %v2056_v8 }
 0x507   : > { %v1082_v46 = vpop.permute.xlu1 %1081 }
 0x508   : > { %v1087_v49 = vsel %vm724_vm3, %v1082_v46, 0 }
 0x50d   : > { %v1838_v44 = vpop.eup %1837 }
 0x50e   : > { %v957_v45 = vmul.f32 %v1838_v44, %v1832_v27  ;;  %v1840_v48 = vpop.eup %1839  ;;  %v1573_v44 = vld [vmem:[#allocation11] ss:$0 sm:$0xff] }
 0x50f   : > { %v1079_v50 = vmul.f32 %v1840_v48, %v1830_v21 }
 0x510   : > { %v958_v47 = vpack.c.bf16 %v957_v45, %v957_v45 }
 0x511   : > { %v1080_v51 = vpack.c.bf16 %v1079_v50, %v1079_v50 }
 0x512   : > { %1662 = vmatmul.mubr.msk.bf16.vlgmr.msra.gmra.mxu0 %vm660_vm2, %v958_v47 }
 0x513   : > { %1672 = vmatpush3.bf16.msra.mxu0 %v1087_v49  ;;  %1673 = vmatprep.mubr.msk.bf16.mxu0 %vm2057_vm1, %v2056_v8 }
 0x514   : > { %1685 = vmatprep.subr.bf16.mxu0 %v2056_v8 }
 0x51a   : > { %1674 = vmatmul.mubr.msk.bf16.vlgmr.msra.gmra.mxu0 %vm660_vm2, %v1080_v51 }
 0x51b   : > { %1689 = vmatprep.mubr.msk.bf16.mxu0 %vm2057_vm1, %v2056_v8  ;;  %1686 = vmatpush3.bf16.msra.mxu0 %v1817_v30 }
 0x51c   : > { %1687 = vmatprep.subr.bf16.mxu0 %v2056_v8 }
 0x51f   : > { %1688 = vmatpush3.bf16.msra.mxu0 %v1818_v31 }
 0x59d   : > { %v762_v52 = vpop.f32.mrf.mxu0 }
 0x59e   : > { %v768_v53 = vpack.c.bf16 %v762_v52, %v762_v52 }
 0x59f   : > { %v1639_v54 = vpop.f32.mrf.mxu0 }
 0x5a0   : > { %770 = vst.msk [vmem:[#allocation2] sm:$0xf] %vm769_vm4, %v768_v53 }
 0x5a1   : > { %v765_v55 = vpop.f32.mrf.mxu0 }
 0x5a2   : > { %v1577_v55 = vld [vmem:[%s2459_s13] ss:$0 sm:$0xff] }
 0x5a3   : > { %v1640_v56 = vpop.f32.mrf.mxu0 }
 0x5ab   : > { %v879_v57 = vpop.f32.mrf.mxu0 }
 0x5ac   : > { %v1588_v58 = vpack.c.bf16 %v879_v57, %v879_v57 }
 0x5ad   : > { %v1651_v59 = vpop.f32.mrf.mxu0 }
 0x5ae   : > { %889 = vrot.lane.b32.xlu0 %v1588_v58, %s2069_s6  ;;  %s1981_s6 = scalar_lea.vmem %s1980_s18, 256 }
 0x5af   : > { %v882_v60 = vpop.f32.mrf.mxu0 }
 0x5b1   : > { %v1652_v61 = vpop.f32.mrf.mxu0 }
 0x5d2   : > { %v1001_v63 = vpop.f32.mrf.mxu0 }
 0x5d3   : > { %v1589_v2 = vpack.c.bf16 %v1001_v63, %v1001_v63 }
 0x5d4   : > { %v1663_v3 = vpop.f32.mrf.mxu0 }
 0x5d5   : > { %1011 = vrot.lane.b32.xlu1 %v1589_v2, %s2070_s27  ;;  %s540_s27 = sand.u32 1, %s2039_s30  }
 0x5d6   : > { %v1004_v4 = vpop.f32.mrf.mxu0  ;;  %s1395_s17 = scalar_lea.sflag [#allocation5], %s540_s27 }
 0x5d8   : > { %v1664_v5 = vpop.f32.mrf.mxu0 }
 0x5da   : > { %v1123_v6 = vpop.f32.mrf.mxu0 }
 0x5db   : > { %v1590_v7 = vpack.c.bf16 %v1123_v6, %v1123_v6 }
 0x5dc   : > { %v1675_v9 = vpop.f32.mrf.mxu0 }
 0x5dd   : > { %1133 = vrot.lane.b32.xlu0 %v1590_v7, %s2071_s25  ;;  %s1543_s25 = sshll.u32 %s540_s27, 3 }
 0x5de   : > { %v1126_v10 = vpop.f32.mrf.mxu0  ;;  %s542_s21 = scalar_lea.vmem [#allocation12], %s1543_s25 }
 0x5df   : > { %s1408_s19 = sshll.u32 %s542_s21, 4  ;;  %s2406_s19 = int_to_ptr.vmem [resolvable:$true] %s1408_s19 }
 0x5e0   : > { %v1676_v11 = vpop.f32.mrf.mxu0  ;;  %s1975_s22 = scalar_lea.vmem %s2406_s19, 128  ;;  %p1982_p5 = scmp.lt.s32.totalorder %s2406_s19, %s1980_s18 }
 0x5e1   : > { %p1976_p7 = scmp.ne.s32.totalorder %s2406_s19, %s1975_s22  ;;  %p1983_p6 = scmp.lt.s32.totalorder %s1981_s6, %s1975_s22 }
 0x5e3   : > { %p1977_p9 = pnand %p1976_p7, %p2490_p8  ;;  %p1984_p0 = por %p1983_p6, %p1982_p5 }
 0x5e5   : > { %p1978_p11 = pneg %p1977_p9 }
 0x5e7   : > { %p1985_p1 = pnand %p1984_p0, %p1978_p11 }
 0x620   : > { %v890_v12 = vpop.permute.xlu0 %889 }
 0x621   : > { %893 = vst.msk [vmem:[#allocation2] sm:$0xf] %vm892_vm5, %v890_v12 }
 0x647   : > { %v1012_v13 = vpop.permute.xlu1 %1011 }
 0x648   : > { %1015 = vst.msk [vmem:[#allocation2] sm:$0xf] %vm1014_vm6, %v1012_v13 }
 0x64f   : > { %v1134_v14 = vpop.permute.xlu0 %1133 }
 0x650   : > { %1137 = vst.msk [vmem:[#allocation2] sm:$0xf] %vm1136_vm7, %v1134_v14 }
 0x657   : > { %v1138_v15 = vld [vmem:[#allocation2] sm:$0xf] }
 0x658   : > { %1682 = vmatmul.mubr.msk.bf16.vlgmr.msra.gmra.mxu1 %vm556_vm0, %v1138_v15 }
 0x659   : > { %1701 = vmatprep.mubr.msk.bf16.mxu1 %vm2057_vm1, %v2056_v8  ;;  %1694 = vmatpush3.bf16.msra.mxu1 %v1819_v40 }
 0x65a   : > { %1695 = vmatprep.subr.bf16.mxu1 %v2056_v8 }
 0x65d   : > { %1696 = vmatpush3.bf16.msra.mxu1 %v1820_v41 }
 0x65e   : > { %1697 = vmatprep.subr.bf16.mxu1 %v2056_v8 }
 0x661   : > { %1698 = vmatpush3.bf16.msra.mxu1 %v1821_v42 }
 0x662   : > { %1699 = vmatprep.subr.bf16.mxu1 %v2056_v8 }
 0x665   : > { %1700 = vmatpush3.bf16.msra.mxu1 %v1822_v43 }
 0x718   : > { %v1199_v17 = vpop.f32.mrf.mxu1 }
 0x719   : > { %v1200_v18 = vadd.f32 %v1567_v16, %v1199_v17 }
 0x71a   : > { %v1683_v19 = vpop.f32.mrf.mxu1 }
 0x71b   : > { %v2369_v20 = vadd.f32 %v1200_v18, %v2272_v0 }
 0x71c   : > { %v1202_v21 = vpop.f32.mrf.mxu1 }
 0x71d   : > { %v1208_v22 = vsel %vm556_vm0, %v2369_v20, 0.0 }
 0x71e   : > { %1209 = vadd.xlane.f32.xlu1 %v1208_v22  ;;  %v1684_v23 = vpop.f32.mrf.mxu1 }
 0x7a7   : > { %v1210_v24 = vpop.xlane.xlu1 %1209 }
 0x7a8   : > { %v1211_v26 = vmul.f32 0.03125, %v1210_v24 }
 0x7aa   : > { %v1212_v27 = vsub.f32 %v2369_v20, %v1211_v26 }
 0x7ac   : > { %v1213_v28 = vmul.f32 %v1212_v27, %v1212_v27 }
 0x7ae   : > { %v1214_v29 = vsel %vm556_vm0, %v1213_v28, 0.0 }
 0x7af   : > { %1215 = vadd.xlane.f32.xlu0 %v1214_v29 }
 0x838   : > { %v1216_v0 = vpop.xlane.xlu0 %1215 }
 0x839   : > { %v1217_v32 = vmul.f32 0.03125, %v1216_v0 }
 0x83b   : > { %v1218_v33 = vadd.f32 1e-05, %v1217_v32 }
 0x83d   : > { %1841 = vrsqrt.f32 %v1218_v33 }
 0x84a   : > { %v1842_v34 = vpop.eup %1841 }
 0x84b   : > { %v1220_v25 = vmul.f32 %v1842_v34, %v1212_v27 }
 0x84d   : > { %v1227_v37 = vmul.f32 %v1571_v35, %v1220_v25 }
 0x84f   : > { %v1234_v38 = vadd.f32 %v1572_v36, %v1227_v37 }
 0x851   : > { %v1235_v39 = vpack.c.bf16 %v1234_v38, %v1234_v38 }
 0x853   : > { %1690 = vmatmul.mubr.msk.bf16.vlgmr.msra.gmra.mxu0 %vm556_vm0, %v1235_v39 }
 0x913   : > { %v1296_v45 = vpop.f32.mrf.mxu0 }
 0x914   : > { %v1297_v46 = vadd.f32 %v1573_v44, %v1296_v45 }
 0x915   : > { %v1691_v47 = vpop.f32.mrf.mxu0 }
 0x916   : > { %v1304_v48 = vmul.f32 0.70710677, %v1297_v46  ;;  %v1302_v52 = vmul.f32 0.5, %v1297_v46 }
 0x917   : > { %v1299_v49 = vpop.f32.mrf.mxu0 }
 0x918   : > { %1843 = verf.f32 %v1304_v48 }
 0x919   : > { %v1692_v50 = vpop.f32.mrf.mxu0 }
 0x925   : > { %v1844_v51 = vpop.eup %1843 }
 0x926   : > { %v1306_v53 = vadd.f32 1.0, %v1844_v51 }
 0x928   : > { %v1307_v54 = vmul.f32 %v1306_v53, %v1302_v52 }
 0x92a   : > { %v1308_v8 = vpack.c.bf16 %v1307_v54, %v1307_v54 }
 0x92c   : > { %1702 = vmatmul.mubr.msk.bf16.vlgmr.msra.gmra.mxu1 %vm1348_vm8, %v1308_v8 }
 0x9ec   : > { %v1386_v56 = vpop.f32.mrf.mxu1 }
 0x9ed   : > { %v1387_v57 = vadd.f32 %v1577_v55, %v1386_v56 }
 0x9ee   : > { %v1703_v58 = vpop.f32.mrf.mxu1 }
 0x9ef   : > { %v1392_v59 = vadd.f32 %v1387_v57, %v2369_v20 }
 0x9f0   : > { %v1389_v60 = vpop.f32.mrf.mxu1 }
 0x9f1   : > { %1393 = vst.msk [vmem:[%s542_s21] sm:$0xff] %vm556_vm0, %v1392_v59 }
 0x9f2   : > { %v1704_v61 = vpop.f32.mrf.mxu1 }
 0x9f3   : > { %1988 = shalt.err (!%p1985_p1)
}
 0x9f4   : > { %s1989_s25 = scalar_lea.hbm %s2404_s15, 128  ;;  %s1993_s16 = scalar_lea.hbm %s2460_s14, 256 }
 0x9f5   : > { %p1990_p13 = scmp.ne.s32.totalorder %s2404_s15, %s1989_s25  ;;  %p1994_p2 = scmp.lt.s32.totalorder %s2404_s15, %s2460_s14 }
 0x9f6   : > { %p1995_p12 = scmp.lt.s32.totalorder %s1993_s16, %s1989_s25 }
 0x9f7   : > { %p1991_p10 = pnand %p1990_p13, %p2490_p8 }
 0x9f8   : > { %p1996_p4 = por %p1995_p12, %p1994_p2 }
 0x9f9   : > { %p1992_p3 = pneg %p1991_p10 }
 0x9fb   : > { %p1997_p7 = pnand %p1996_p4, %p1992_p3 }
 0x9fd   : > { %2000 = shalt.err (!%p1997_p7)
}
 0x9fe   : > { %1725 = dma.vmem_to_hbm [thread:$0]  (%p2490_p8), %s2406_s19, 128, %s2404_s15, %s1395_s17  }
 0x9ff PF: > { %s2491_s24 = sld [smem:[#allocation19_spill]] }
 0xa00   : > { %s2492_s29 = sld [smem:[#allocation17_spill]] }
 0xa01   : > { %s2493_s22 = sld [smem:[#allocation22_spill]] }
 0xa05   : > { %p1757_p9 = scmp.ge.s32.totalorder %s2491_s24, 2 }
 0xa06   : > { %s1420_s26 = sand.u32 1, %s2492_s29  }
 0xa07   : > { %p2494_p11 = scmp.ne.s32.totalorder %s2493_s22, 0  ;;  %s1421_s18 = scalar_lea.sflag [#allocation5], %s1420_s26 }
 0xa09   : > { %p1744_p5 = pnand %p1757_p9, %p2494_p11 }
 0xa0b   : > { %p1745_p6 = pneg %p1744_p5 }
 0xa0d   : > { %2030 = dma.done.wait (%p1745_p6), %s1421_s18, 128  }
 0xa0e   : > { %2032 = vsyncadd (%p1745_p6), %s1421_s18, 4294967168  ;;  %s2495_s16 = sld [smem:[#allocation20_spill]]  ;;  %s2498_s29 = smov %s2039_s30 }
 0xa0f   : > { %s2496_s6 = sld [smem:[#allocation18_spill]] }
 0xa10   : > { %s2497_s15 = sld [smem:[#allocation21_spill]] }
 0xa14   : > { %p27_p0 = scmp.ge.s32.totalorder %s2495_s16, 4  }
 0xa15   : > { %s2499_s30 = smov %s2496_s6 }
 0xa16   :  { %29 = sbr.rel (!%p27_p0) target bundleno = 8 (0x8), region = 138 }
 0xa1b   :  { %1426 = vsyncpa [#allocation4], 1 }
 0xa1c   :  { %1428 = vsyncpa [#allocation4 + $0x1], 1 }
 0xa1d   :  { %1429 = vsyncpa [#allocation7], 1 }
 0xa1e   :  { %1430 = vsyncpa [#allocation10], 1 }
 0xa1f   :  { %1431 = vsyncpa [#allocation5], 1 }
 0xa20   :  { %1433 = vsyncpa [#allocation5 + $0x1], 1 }

</bundles_post_ra>
